<compile_context>
chip_gen: v7x
topology: tpu7x:2x2x1
jax: 0.10.0
libtpu: 0.0.40
codegen_flags: <defaults>
</compile_context>

<pallas_src>
import jax
import jax.numpy as jnp
from jax import lax
from jax.experimental import pallas as pl
from jax.experimental.pallas import tpu as pltpu

_HALO = 8  # front halo rows in every per-layer buffer (>= conv pad, sublane aligned)


# ---------------------------------------------------------------------------
# fused kernel
# ---------------------------------------------------------------------------
def _make_fused_kernel(cfgs, B, mm_dtype):
    n = len(cfgs)
    H = _HALO

    def kernel(*args):
        x_ref = args[0]
        prm = args[1:1 + 3 * n]
        o_ref = args[1 + 3 * n]
        scr = args[2 + 3 * n:]

        si = 0
        cur_in, src_off = x_ref, 0          # layer 0: conv halo baked in by the wrapper DMA
        pooled = None
        for li, c in enumerate(cfgs):
            S, K, C_in, C_out = c["S"], c["K"], c["C_in"], c["C_out"]
            L_conv, pad = c["L_conv"], c["pad"]
            BS = B * S
            R = H + BS

            if li > 0:
                xin = scr[si]
                si += 1
                # Halo rows supply sample 0's left conv padding; keep them zero.
                xin[0:H, :] = jnp.zeros((H, C_in), xin.dtype)
                # Previous layer's pooled slab (per-sample stride S == prev_S // 2,
                # junk rows already zeroed) IS this layer's input layout:
                # one bulk store, no per-sample repack.
                xin[H:H + BS, :] = pooled.astype(xin.dtype)
                cur_in, src_off = xin, H - pad
            xcol, ybuf = scr[si], scr[si + 1]
            si += 2

            # ---- im2col: K shifted bulk slab copies (all samples at once) ----
            # conv output j of sample b lands at row H + b*S + j; tap k reads
            # cur_in[src_off + b*S + j + k].
            D = (B - 1) * S + L_conv
            # Rows outside [H, H+D) never receive tap data; keep them zero so every
            # MXU operand row stays finite (their outputs are scrubbed by the mask).
            xcol[0:H, :] = jnp.zeros((H, K * C_in), xcol.dtype)
            if R - H - D > 0:
                xcol[H + D:R, :] = jnp.zeros((R - H - D, K * C_in), xcol.dtype)
            for k in range(K):
                xcol[H:H + D, k * C_in:(k + 1) * C_in] = (
                    cur_in[src_off + k:src_off + k + D, :])

            # ---- Conv1d: ONE MXU matmul with the full K*C_in contraction ----
            w_ref, sc_ref, sh_ref = prm[3 * li:3 * li + 3]
            y = jnp.dot(xcol[...], w_ref[...], preferred_element_type=jnp.float32)

            # ---- folded BatchNorm1d (inference) + ReLU ----
            y = jnp.maximum(y * sc_ref[...] + sh_ref[...], 0.0)

            # ---- zero rows that are not real conv outputs (they become the pool's
            #      padding and the next layer's conv padding).  jnp.where SELECTS, so
            #      this stays correct even if a junk row were non-finite; do NOT turn
            #      it into a multiply without keeping the xcol zero-init above.
            r = lax.broadcasted_iota(jnp.int32, (R, 1), 0)
            valid = (r >= H) & (((r - H) % S) < L_conv)
            y = jnp.where(valid, y, 0.0)
            ybuf[...] = y

            # ---- MaxPool1d(kernel=2, stride=2, padding=1): global stride-2 max ----
            # Window p of sample b covers rows H + b*S + 2p - 1 / + 2p; the "-1" row
            # is always a masked-zero row (post-ReLU values >= 0, so 0 == -inf pad).
            half = BS // 2
            pooled = jnp.maximum(ybuf[pl.ds(H - 1, half, stride=2), :],
                                 ybuf[pl.ds(H, half, stride=2), :])
            # Dropout (conv_block1) is identity in inference mode.

        # final pooled slab -> one bulk write; wrapper slices off the junk rows.
        o_ref[...] = pooled.astype(o_ref.dtype)

    return kernel


# ---------------------------------------------------------------------------
# wrapper
# ---------------------------------------------------------------------------
def feature_extractor_1dcnn(x_ncl, params, *, batch_tile=128,
                            matmul_dtype=jnp.bfloat16,
                            vmem_budget_bytes=36 * 2**20):
    """Inference forward.  x_ncl: (N, C_in, L) like PyTorch; returns (N, emb, L_out)."""
    N, C0, L = x_ncl.shape
    n = len(params)
    mm_dtype = jnp.dtype(matmul_dtype)
    mm_bytes = mm_dtype.itemsize
    H = _HALO

    # ---- static per-layer geometry ----
    cfgs = []
    L_cur = L
    for p in params:
        K = int(p["k"])
        pad = K // 2
        C_out, C_in = int(p["w"].shape[0]), int(p["w"].shape[1])
        L_conv = L_cur + 2 * pad - K + 1
        L_pool = L_conv // 2 + 1
        cfgs.append(dict(K=K, pad=pad, L_in=L_cur, L_conv=L_conv, L_pool=L_pool,
                         C_in=C_in, C_out=C_out))
        L_cur = L_pool
    L_out, E = L_cur, cfgs[-1]["C_out"]
    assert cfgs[0]["C_in"] == C0
    assert all(c["pad"] <= H for c in cfgs)

    # ---- per-sample stride chain: S_l = S_0 / 2**l (pooling halves it), S_0 aligned ----
    def _chain(S0):
        out, Sl = [], S0
        for li, c in enumerate(cfgs):
            need = c["L_in"] + (2 * c["pad"] if li == 0 else c["pad"])
            if Sl % 2 or Sl < need or Sl < c["L_conv"]:
                return None
            out.append(Sl)
            Sl //= 2
        if Sl < cfgs[-1]["L_pool"]:
            return None
        return out

    step = max(8, 2 ** n)
    S0 = -(-(L + 2 * cfgs[0]["pad"]) // step) * step
    while _chain(S0) is None:
        S0 += step
    strides = _chain(S0)
    for c, Sl in zip(cfgs, strides):
        c["S"] = Sl
    S_out = strides[-1] // 2

    # ---- batch tile: as large as a generation-safe VMEM budget allows ----
    def _pl_lanes(cols):
        return max(128, -(-cols // 128) * 128)

    def _pr_rows(rows):
        return -(-rows // 8) * 8

    def _vmem_bytes(b):
        tot = 0
        for li, c in enumerate(cfgs):
            R = _pr_rows(H + b * c["S"])
            if li > 0:
                tot += R * _pl_lanes(c["C_in"]) * mm_bytes              # xin
            tot += R * _pl_lanes(c["K"] * c["C_in"]) * mm_bytes         # im2col slab
            tot += R * _pl_lanes(c["C_out"]) * 4                        # ybuf (f32)
        tot += 2 * _pr_rows(b * cfgs[0]["S"]) * _pl_lanes(C0) * mm_bytes   # input (x2 buf)
        tot += 2 * _pr_rows(b * S_out) * _pl_lanes(E) * 4                  # output (x2 buf)
        for c in cfgs:                                                     # params (x2 buf)
            tot += 2 * (_pr_rows(c["K"] * c["C_in"]) * _pl_lanes(c["C_out"]) * mm_bytes
                        + 2 * 8 * _pl_lanes(c["C_out"]) * 4)
        return tot

    B = max(1, min(batch_tile, N))
    while B > 8 and _vmem_bytes(B) > vmem_budget_bytes:
        B = max(8, B // 2)
    if B < N:
        B = max(8, (B // 8) * 8)       # grid > 1: keep batch-dim blocks 8-row aligned
    N_pad = -(-N // B) * B
    grid = N_pad // B

    # ---- inputs: pad + flatten to the per-sample-strided channels-last layout ----
    pad0, S0c = cfgs[0]["pad"], cfgs[0]["S"]
    x = jnp.transpose(x_ncl, (0, 2, 1)).astype(mm_dtype)                 # (N, L, C)
    x = jnp.pad(x, ((0, N_pad - N), (pad0, S0c - L - pad0), (0, 0)))     # conv halo + stride
    x = x.reshape(N_pad * S0c, C0)                                       # DMA lands pre-laid-out

    flat_ins = [x]
    in_specs = [pl.BlockSpec((B * S0c, C0), lambda i: (i, 0))]
    for p, c in zip(params, cfgs):
        w_slab = (jnp.transpose(jnp.asarray(p["w"], jnp.float32), (2, 1, 0))
                  .reshape(c["K"] * c["C_in"], c["C_out"]).astype(mm_dtype))
        scale = jnp.asarray(p["scale"], jnp.float32).reshape(1, c["C_out"])
        shift = jnp.asarray(p["shift"], jnp.float32).reshape(1, c["C_out"])
        flat_ins += [w_slab, scale, shift]
        in_specs += [pl.BlockSpec((c["K"] * c["C_in"], c["C_out"]), lambda i: (0, 0)),
                     pl.BlockSpec((1, c["C_out"]), lambda i: (0, 0)),
                     pl.BlockSpec((1, c["C_out"]), lambda i: (0, 0))]

    scratch_shapes = []
    for li, c in enumerate(cfgs):
        R = H + B * c["S"]
        if li > 0:
            scratch_shapes.append(pltpu.VMEM((R, c["C_in"]), mm_dtype))          # xin
        scratch_shapes.append(pltpu.VMEM((R, c["K"] * c["C_in"]), mm_dtype))     # im2col slab
        scratch_shapes.append(pltpu.VMEM((R, c["C_out"]), jnp.float32))          # conv+bn+relu

    flops = grid * sum(2 * (H + B * c["S"]) * c["K"] * c["C_in"] * c["C_out"] for c in cfgs)
    bytes_acc = sum(int(a.size) * a.dtype.itemsize for a in flat_ins) + N_pad * S_out * E * 4
    vmem_limit = int(min(100 * 2**20,
                         max(32 * 2**20, int(_vmem_bytes(B) * 1.25) + 4 * 2**20)))

    out = pl.pallas_call(
        _make_fused_kernel(cfgs, B, mm_dtype),
        out_shape=jax.ShapeDtypeStruct((N_pad * S_out, E), jnp.float32),
        grid=(grid,),
        in_specs=in_specs,
        out_specs=pl.BlockSpec((B * S_out, E), lambda i: (i, 0)),
        scratch_shapes=scratch_shapes,
        compiler_params=pltpu.CompilerParams(
            dimension_semantics=("parallel",),
            vmem_limit_bytes=vmem_limit),
        cost_estimate=pl.CostEstimate(flops=int(flops), transcendentals=0,
                                      bytes_accessed=int(bytes_acc)),
    )(*flat_ins)

    out = out.reshape(N_pad, S_out, E)[:N, :L_out, :]
    return jnp.transpose(out, (0, 2, 1))                                 # (N, emb, L_out)


# ---------------------------------------------------------------------------
# params + pure-JAX reference (inference semantics)
# ---------------------------------------------------------------------------
def init_params(key, input_channels, num_hidden, embedding_dimension, kernel_size=8):
    layer_dims = [
        (input_channels, num_hidden, kernel_size),   # conv_block1
        (num_hidden, num_hidden * 2, 8),             # conv_block2
        (num_hidden * 2, embedding_dimension, 8),    # conv_block3
    ]
    params, eps = [], 1e-5
    for (cin, cout, k) in layer_dims:
        key, k1, k2, k3, k4, k5 = jax.random.split(key, 6)
        w = jax.random.normal(k1, (cout, cin, k), jnp.float32) * 0.1        # Conv1d weight
        gamma = jax.random.uniform(k2, (cout,), jnp.float32, 0.5, 1.5)      # BN weight
        beta = jax.random.normal(k3, (cout,), jnp.float32) * 0.1            # BN bias
        rmean = jax.random.normal(k4, (cout,), jnp.float32) * 0.1           # BN running_mean
        rvar = jax.random.uniform(k5, (cout,), jnp.float32, 0.5, 1.5)       # BN running_var
        scale = gamma / jnp.sqrt(rvar + eps)
        shift = beta - rmean * scale
        params.append(dict(w=w, scale=scale.reshape(1, -1),
                           shift=shift.reshape(1, -1), k=k))
    return params


def reference_forward(x_ncl, params):
    x = x_ncl
    for p in params:
        pad = p["k"] // 2
        y = lax.conv_general_dilated(
            x, p["w"], window_strides=(1,), padding=[(pad, pad)],
            dimension_numbers=("NCH", "OIH", "NCH"))
        y = y * p["scale"].reshape(1, -1, 1) + p["shift"].reshape(1, -1, 1)
        y = jnp.maximum(y, 0.0)
        y = lax.reduce_window(y, -jnp.inf, lax.max,
                              window_dimensions=(1, 1, 2),
                              window_strides=(1, 1, 2),
                              padding=((0, 0), (0, 0), (1, 1)))
        x = y
    return x


if __name__ == "__main__":
    key = jax.random.PRNGKey(0)
    kx, kp = jax.random.split(key)

    # small shapes consistent with the module
    N, C_in, L = 2, 4, 16
    num_hidden, embedding_dimension = 8, 16

    x = jax.random.normal(kx, (N, C_in, L), jnp.float32)        # PyTorch-style NCL input
    params = init_params(kp, C_in, num_hidden, embedding_dimension, kernel_size=8)
    ref = reference_forward(x, params)

    # f32 MXU operands: tight numerical self-check.
    out = jax.block_until_ready(feature_extractor_1dcnn(x, params, matmul_dtype=jnp.float32))
    assert out.shape == ref.shape, (out.shape, ref.shape)
    assert jnp.allclose(out, ref, atol=1e-4, rtol=1e-4), float(jnp.max(jnp.abs(out - ref)))

    # default fast path (bf16 MXU operands, f32 accumulation/epilogue): loose check.
    out_bf = jax.block_until_ready(feature_extractor_1dcnn(x, params))
    assert out_bf.shape == ref.shape
    assert jnp.allclose(out_bf, ref, atol=1e-1, rtol=1e-1), float(jnp.max(jnp.abs(out_bf - ref)))

    # multi-grid-step path (batch > tile, batch padding) correctness check.
    x2 = jax.random.normal(kx, (20, C_in, L), jnp.float32)
    ref2 = reference_forward(x2, params)
    out2 = jax.block_until_ready(
        feature_extractor_1dcnn(x2, params, batch_tile=8, matmul_dtype=jnp.float32))
    assert jnp.allclose(out2, ref2, atol=1e-4, rtol=1e-4), float(jnp.max(jnp.abs(out2 - ref2)))

    print("KERNEL_OK")
</pallas_src>

<mosaic_0001>
module attributes {stable_mosaic.version = 11 : i64} {
  func.func @kernel(%arg0: i32, %arg1: memref<80x4xf32, #tpu.memory_space<vmem>>, %arg2: memref<32x8xf32, #tpu.memory_space<vmem>>, %arg3: memref<1x8xf32, #tpu.memory_space<vmem>>, %arg4: memref<1x8xf32, #tpu.memory_space<vmem>>, %arg5: memref<64x16xf32, #tpu.memory_space<vmem>>, %arg6: memref<1x16xf32, #tpu.memory_space<vmem>>, %arg7: memref<1x16xf32, #tpu.memory_space<vmem>>, %arg8: memref<128x16xf32, #tpu.memory_space<vmem>>, %arg9: memref<1x16xf32, #tpu.memory_space<vmem>>, %arg10: memref<1x16xf32, #tpu.memory_space<vmem>>, %arg11: memref<10x16xf32, #tpu.memory_space<vmem>>, %arg12: memref<88x32xf32, #tpu.memory_space<vmem>>, %arg13: memref<88x8xf32, #tpu.memory_space<vmem>>, %arg14: memref<48x8xf32, #tpu.memory_space<vmem>>, %arg15: memref<48x64xf32, #tpu.memory_space<vmem>>, %arg16: memref<48x16xf32, #tpu.memory_space<vmem>>, %arg17: memref<28x16xf32, #tpu.memory_space<vmem>>, %arg18: memref<28x128xf32, #tpu.memory_space<vmem>>, %arg19: memref<28x16xf32, #tpu.memory_space<vmem>>) attributes {dimension_semantics = [#tpu.dimension_semantics<parallel>], iteration_bounds = array<i64: 1>, scalar_prefetch = 0 : i64, scratch_operands = 8 : i64, tpu.core_type = #tpu.core_type<tc>, window_params = [{transform_indices = @transform_0, window_bounds = array<i64: 80, 4>}, {pipeline_mode = #tpu.pipeline_mode<synchronous>, transform_indices = @transform_1, window_bounds = array<i64: 32, 8>}, {pipeline_mode = #tpu.pipeline_mode<synchronous>, transform_indices = @transform_2, window_bounds = array<i64: 1, 8>}, {pipeline_mode = #tpu.pipeline_mode<synchronous>, transform_indices = @transform_3, window_bounds = array<i64: 1, 8>}, {pipeline_mode = #tpu.pipeline_mode<synchronous>, transform_indices = @transform_4, window_bounds = array<i64: 64, 16>}, {pipeline_mode = #tpu.pipeline_mode<synchronous>, transform_indices = @transform_5, window_bounds = array<i64: 1, 16>}, {pipeline_mode = #tpu.pipeline_mode<synchronous>, transform_indices = @transform_6, window_bounds = array<i64: 1, 16>}, {pipeline_mode = #tpu.pipeline_mode<synchronous>, transform_indices = @transform_7, window_bounds = array<i64: 128, 16>}, {pipeline_mode = #tpu.pipeline_mode<synchronous>, transform_indices = @transform_8, window_bounds = array<i64: 1, 16>}, {pipeline_mode = #tpu.pipeline_mode<synchronous>, transform_indices = @transform_9, window_bounds = array<i64: 1, 16>}, {transform_indices = @transform_10, window_bounds = array<i64: 10, 16>}]} {
    %cst = arith.constant 0.000000e+00 : f32
    %0 = vector.broadcast %cst : f32 to vector<8x32xf32>
    %c0 = arith.constant 0 : index
    %c0_0 = arith.constant 0 : index
    %1 = vector.load %arg12[%c0, %c0_0] : memref<88x32xf32, #tpu.memory_space<vmem>>, vector<8x32xf32>
    tpu.vector_store %arg12[%c0, %c0_0], %0 {strides = array<i32>} : memref<88x32xf32, #tpu.memory_space<vmem>>, vector<8x32xf32>,
    %cst_1 = arith.constant 0.000000e+00 : f32
    %2 = vector.broadcast %cst_1 : f32 to vector<23x32xf32>
    %c65 = arith.constant 65 : index
    %c0_2 = arith.constant 0 : index
    %3 = vector.load %arg12[%c65, %c0_2] : memref<88x32xf32, #tpu.memory_space<vmem>>, vector<23x32xf32>
    tpu.vector_store %arg12[%c65, %c0_2], %2 {strides = array<i32>} : memref<88x32xf32, #tpu.memory_space<vmem>>, vector<23x32xf32>,
    %c0_3 = arith.constant 0 : index
    %c0_4 = arith.constant 0 : index
    %4 = vector.load %arg1[%c0_3, %c0_4] : memref<80x4xf32, #tpu.memory_space<vmem>>, vector<57x4xf32>
    %c8 = arith.constant 8 : index
    %c0_5 = arith.constant 0 : index
    %5 = vector.load %arg12[%c8, %c0_5] : memref<88x32xf32, #tpu.memory_space<vmem>>, vector<57x4xf32>
    tpu.vector_store %arg12[%c8, %c0_5], %4 {strides = array<i32>} : memref<88x32xf32, #tpu.memory_space<vmem>>, vector<57x4xf32>,
    %c1 = arith.constant 1 : index
    %c0_6 = arith.constant 0 : index
    %6 = vector.load %arg1[%c1, %c0_6] : memref<80x4xf32, #tpu.memory_space<vmem>>, vector<57x4xf32>
    %c8_7 = arith.constant 8 : index
    %c4 = arith.constant 4 : index
    %7 = vector.load %arg12[%c8_7, %c4] : memref<88x32xf32, #tpu.memory_space<vmem>>, vector<57x4xf32>
    tpu.vector_store %arg12[%c8_7, %c4], %6 {strides = array<i32>} : memref<88x32xf32, #tpu.memory_space<vmem>>, vector<57x4xf32>,
    %c2 = arith.constant 2 : index
    %c0_8 = arith.constant 0 : index
    %8 = vector.load %arg1[%c2, %c0_8] : memref<80x4xf32, #tpu.memory_space<vmem>>, vector<57x4xf32>
    %c8_9 = arith.constant 8 : index
    %c8_10 = arith.constant 8 : index
    %9 = vector.load %arg12[%c8_9, %c8_10] : memref<88x32xf32, #tpu.memory_space<vmem>>, vector<57x4xf32>
    tpu.vector_store %arg12[%c8_9, %c8_10], %8 {strides = array<i32>} : memref<88x32xf32, #tpu.memory_space<vmem>>, vector<57x4xf32>,
    %c3 = arith.constant 3 : index
    %c0_11 = arith.constant 0 : index
    %10 = vector.load %arg1[%c3, %c0_11] : memref<80x4xf32, #tpu.memory_space<vmem>>, vector<57x4xf32>
    %c8_12 = arith.constant 8 : index
    %c12 = arith.constant 12 : index
    %11 = vector.load %arg12[%c8_12, %c12] : memref<88x32xf32, #tpu.memory_space<vmem>>, vector<57x4xf32>
    tpu.vector_store %arg12[%c8_12, %c12], %10 {strides = array<i32>} : memref<88x32xf32, #tpu.memory_space<vmem>>, vector<57x4xf32>,
    %c4_13 = arith.constant 4 : index
    %c0_14 = arith.constant 0 : index
    %12 = vector.load %arg1[%c4_13, %c0_14] : memref<80x4xf32, #tpu.memory_space<vmem>>, vector<57x4xf32>
    %c8_15 = arith.constant 8 : index
    %c16 = arith.constant 16 : index
    %13 = vector.load %arg12[%c8_15, %c16] : memref<88x32xf32, #tpu.memory_space<vmem>>, vector<57x4xf32>
    tpu.vector_store %arg12[%c8_15, %c16], %12 {strides = array<i32>} : memref<88x32xf32, #tpu.memory_space<vmem>>, vector<57x4xf32>,
    %c5 = arith.constant 5 : index
    %c0_16 = arith.constant 0 : index
    %14 = vector.load %arg1[%c5, %c0_16] : memref<80x4xf32, #tpu.memory_space<vmem>>, vector<57x4xf32>
    %c8_17 = arith.constant 8 : index
    %c20 = arith.constant 20 : index
    %15 = vector.load %arg12[%c8_17, %c20] : memref<88x32xf32, #tpu.memory_space<vmem>>, vector<57x4xf32>
    tpu.vector_store %arg12[%c8_17, %c20], %14 {strides = array<i32>} : memref<88x32xf32, #tpu.memory_space<vmem>>, vector<57x4xf32>,
    %c6 = arith.constant 6 : index
    %c0_18 = arith.constant 0 : index
    %16 = vector.load %arg1[%c6, %c0_18] : memref<80x4xf32, #tpu.memory_space<vmem>>, vector<57x4xf32>
    %c8_19 = arith.constant 8 : index
    %c24 = arith.constant 24 : index
    %17 = vector.load %arg12[%c8_19, %c24] : memref<88x32xf32, #tpu.memory_space<vmem>>, vector<57x4xf32>
    tpu.vector_store %arg12[%c8_19, %c24], %16 {strides = array<i32>} : memref<88x32xf32, #tpu.memory_space<vmem>>, vector<57x4xf32>,
    %c7 = arith.constant 7 : index
    %c0_20 = arith.constant 0 : index
    %18 = vector.load %arg1[%c7, %c0_20] : memref<80x4xf32, #tpu.memory_space<vmem>>, vector<57x4xf32>
    %c8_21 = arith.constant 8 : index
    %c28 = arith.constant 28 : index
    %19 = vector.load %arg12[%c8_21, %c28] : memref<88x32xf32, #tpu.memory_space<vmem>>, vector<57x4xf32>
    tpu.vector_store %arg12[%c8_21, %c28], %18 {strides = array<i32>} : memref<88x32xf32, #tpu.memory_space<vmem>>, vector<57x4xf32>,
    %c0_22 = arith.constant 0 : index
    %c0_23 = arith.constant 0 : index
    %20 = vector.load %arg12[%c0_22, %c0_23] : memref<88x32xf32, #tpu.memory_space<vmem>>, vector<88x32xf32>
    %c0_24 = arith.constant 0 : index
    %c0_25 = arith.constant 0 : index
    %21 = vector.load %arg2[%c0_24, %c0_25] : memref<32x8xf32, #tpu.memory_space<vmem>>, vector<32x8xf32>
    %cst_26 = arith.constant dense<0.000000e+00> : vector<88x8xf32>
    %22 = tpu.matmul %20, %21, %cst_26 {dimension_numbers = #tpu.dot_dimension_numbers<[1], [0], [0], [1], [0, 0, 1, 1], [], []>} : vector<88x32xf32>, vector<32x8xf32>, vector<88x8xf32> -> vector<88x8xf32>
    %c0_27 = arith.constant 0 : index
    %c0_28 = arith.constant 0 : index
    %23 = vector.load %arg3[%c0_27, %c0_28] : memref<1x8xf32, #tpu.memory_space<vmem>>, vector<1x8xf32>
    %24 = vector.broadcast %23 : vector<1x8xf32> to vector<88x8xf32>
    %25 = arith.mulf %22, %24 : vector<88x8xf32>
    %c0_29 = arith.constant 0 : index
    %c0_30 = arith.constant 0 : index
    %26 = vector.load %arg4[%c0_29, %c0_30] : memref<1x8xf32, #tpu.memory_space<vmem>>, vector<1x8xf32>
    %27 = vector.broadcast %26 : vector<1x8xf32> to vector<88x8xf32>
    %28 = arith.addf %25, %27 : vector<88x8xf32>
    %cst_31 = arith.constant 0.000000e+00 : f32
    %29 = vector.broadcast %cst_31 : f32 to vector<88x8xf32>
    %30 = arith.maximumf %28, %29 : vector<88x8xf32>
    %31 = tpu.iota {dimensions = array<i32: 0>} : vector<88x1xi32>
    %c8_i32 = arith.constant 8 : i32
    %32 = vector.broadcast %c8_i32 : i32 to vector<88x1xi32>
    %33 = arith.cmpi sge, %31, %32 : vector<88x1xi32>
    %c8_i32_32 = arith.constant 8 : i32
    %34 = vector.broadcast %c8_i32_32 : i32 to vector<88x1xi32>
    %35 = arith.subi %31, %34 : vector<88x1xi32>
    %c40_i32 = arith.constant 40 : i32
    %c0_i32 = arith.constant 0 : i32
    %36 = arith.cmpi eq, %c40_i32, %c0_i32 : i32
    %c1_i32 = arith.constant 1 : i32
    %37 = arith.select %36, %c1_i32, %c40_i32 : i32
    %38 = vector.broadcast %37 : i32 to vector<88x1xi32>
    %39 = arith.remsi %35, %38 : vector<88x1xi32>
    %c0_i32_33 = arith.constant 0 : i32
    %40 = vector.broadcast %c0_i32_33 : i32 to vector<88x1xi32>
    %41 = arith.cmpi ne, %39, %40 : vector<88x1xi32>
    %c0_i32_34 = arith.constant 0 : i32
    %42 = vector.broadcast %c0_i32_34 : i32 to vector<88x1xi32>
    %43 = arith.cmpi slt, %39, %42 : vector<88x1xi32>
    %c0_i32_35 = arith.constant 0 : i32
    %44 = arith.cmpi slt, %37, %c0_i32_35 : i32
    %45 = vector.broadcast %44 : i1 to vector<88x1xi1>
    %46 = vector.broadcast %45 : vector<88x1xi1> to vector<88x1xi1>
    %47 = arith.xori %43, %46 : vector<88x1xi1>
    %48 = arith.andi %47, %41 : vector<88x1xi1>
    %49 = vector.broadcast %37 : i32 to vector<88x1xi32>
    %50 = arith.addi %39, %49 : vector<88x1xi32>
    %51 = arith.select %48, %50, %39 : vector<88x1xi1>, vector<88x1xi32>
    %c17_i32 = arith.constant 17 : i32
    %52 = vector.broadcast %c17_i32 : i32 to vector<88x1xi32>
    %53 = arith.cmpi slt, %51, %52 : vector<88x1xi32>
    %54 = arith.andi %33, %53 : vector<88x1xi1>
    %cst_36 = arith.constant 0.000000e+00 : f32
    %55 = vector.shape_cast %54 : vector<88x1xi1> to vector<88x1xi1>
    %56 = vector.broadcast %55 : vector<88x1xi1> to vector<88x8xi1>
    %57 = vector.broadcast %cst_36 : f32 to vector<88x8xf32>
    %58 = arith.select %56, %30, %57 : vector<88x8xi1>, vector<88x8xf32>
    %c0_37 = arith.constant 0 : index
    %c0_38 = arith.constant 0 : index
    %59 = vector.load %arg13[%c0_37, %c0_38] : memref<88x8xf32, #tpu.memory_space<vmem>>, vector<88x8xf32>
    tpu.vector_store %arg13[%c0_37, %c0_38], %58 {strides = array<i32>} : memref<88x8xf32, #tpu.memory_space<vmem>>, vector<88x8xf32>,
    %c7_39 = arith.constant 7 : index
    %c0_40 = arith.constant 0 : index
    %60 = tpu.strided_load %arg13[%c7_39, %c0_40] {strides = array<i32: 2, 1>} : memref<88x8xf32, #tpu.memory_space<vmem>>, vector<40x8xf32>
    %c8_41 = arith.constant 8 : index
    %c0_42 = arith.constant 0 : index
    %61 = tpu.strided_load %arg13[%c8_41, %c0_42] {strides = array<i32: 2, 1>} : memref<88x8xf32, #tpu.memory_space<vmem>>, vector<40x8xf32>
    %62 = arith.maximumf %60, %61 : vector<40x8xf32>
    %cst_43 = arith.constant 0.000000e+00 : f32
    %63 = vector.broadcast %cst_43 : f32 to vector<8x8xf32>
    %c0_44 = arith.constant 0 : index
    %c0_45 = arith.constant 0 : index
    %64 = vector.load %arg14[%c0_44, %c0_45] : memref<48x8xf32, #tpu.memory_space<vmem>>, vector<8x8xf32>
    tpu.vector_store %arg14[%c0_44, %c0_45], %63 {strides = array<i32>} : memref<48x8xf32, #tpu.memory_space<vmem>>, vector<8x8xf32>,
    %c8_46 = arith.constant 8 : index
    %c0_47 = arith.constant 0 : index
    %65 = vector.load %arg14[%c8_46, %c0_47] : memref<48x8xf32, #tpu.memory_space<vmem>>, vector<40x8xf32>
    tpu.vector_store %arg14[%c8_46, %c0_47], %62 {strides = array<i32>} : memref<48x8xf32, #tpu.memory_space<vmem>>, vector<40x8xf32>,
    %cst_48 = arith.constant 0.000000e+00 : f32
    %66 = vector.broadcast %cst_48 : f32 to vector<8x64xf32>
    %c0_49 = arith.constant 0 : index
    %c0_50 = arith.constant 0 : index
    %67 = vector.load %arg15[%c0_49, %c0_50] : memref<48x64xf32, #tpu.memory_space<vmem>>, vector<8x64xf32>
    tpu.vector_store %arg15[%c0_49, %c0_50], %66 {strides = array<i32>} : memref<48x64xf32, #tpu.memory_space<vmem>>, vector<8x64xf32>,
    %cst_51 = arith.constant 0.000000e+00 : f32
    %68 = vector.broadcast %cst_51 : f32 to vector<10x64xf32>
    %c38 = arith.constant 38 : index
    %c0_52 = arith.constant 0 : index
    %69 = vector.load %arg15[%c38, %c0_52] : memref<48x64xf32, #tpu.memory_space<vmem>>, vector<10x64xf32>
    tpu.vector_store %arg15[%c38, %c0_52], %68 {strides = array<i32>} : memref<48x64xf32, #tpu.memory_space<vmem>>, vector<10x64xf32>,
    %c4_53 = arith.constant 4 : index
    %c0_54 = arith.constant 0 : index
    %70 = vector.load %arg14[%c4_53, %c0_54] : memref<48x8xf32, #tpu.memory_space<vmem>>, vector<30x8xf32>
    %c8_55 = arith.constant 8 : index
    %c0_56 = arith.constant 0 : index
    %71 = vector.load %arg15[%c8_55, %c0_56] : memref<48x64xf32, #tpu.memory_space<vmem>>, vector<30x8xf32>
    tpu.vector_store %arg15[%c8_55, %c0_56], %70 {strides = array<i32>} : memref<48x64xf32, #tpu.memory_space<vmem>>, vector<30x8xf32>,
    %c5_57 = arith.constant 5 : index
    %c0_58 = arith.constant 0 : index
    %72 = vector.load %arg14[%c5_57, %c0_58] : memref<48x8xf32, #tpu.memory_space<vmem>>, vector<30x8xf32>
    %c8_59 = arith.constant 8 : index
    %c8_60 = arith.constant 8 : index
    %73 = vector.load %arg15[%c8_59, %c8_60] : memref<48x64xf32, #tpu.memory_space<vmem>>, vector<30x8xf32>
    tpu.vector_store %arg15[%c8_59, %c8_60], %72 {strides = array<i32>} : memref<48x64xf32, #tpu.memory_space<vmem>>, vector<30x8xf32>,
    %c6_61 = arith.constant 6 : index
    %c0_62 = arith.constant 0 : index
    %74 = vector.load %arg14[%c6_61, %c0_62] : memref<48x8xf32, #tpu.memory_space<vmem>>, vector<30x8xf32>
    %c8_63 = arith.constant 8 : index
    %c16_64 = arith.constant 16 : index
    %75 = vector.load %arg15[%c8_63, %c16_64] : memref<48x64xf32, #tpu.memory_space<vmem>>, vector<30x8xf32>
    tpu.vector_store %arg15[%c8_63, %c16_64], %74 {strides = array<i32>} : memref<48x64xf32, #tpu.memory_space<vmem>>, vector<30x8xf32>,
    %c7_65 = arith.constant 7 : index
    %c0_66 = arith.constant 0 : index
    %76 = vector.load %arg14[%c7_65, %c0_66] : memref<48x8xf32, #tpu.memory_space<vmem>>, vector<30x8xf32>
    %c8_67 = arith.constant 8 : index
    %c24_68 = arith.constant 24 : index
    %77 = vector.load %arg15[%c8_67, %c24_68] : memref<48x64xf32, #tpu.memory_space<vmem>>, vector<30x8xf32>
    tpu.vector_store %arg15[%c8_67, %c24_68], %76 {strides = array<i32>} : memref<48x64xf32, #tpu.memory_space<vmem>>, vector<30x8xf32>,
    %c8_69 = arith.constant 8 : index
    %c0_70 = arith.constant 0 : index
    %78 = vector.load %arg14[%c8_69, %c0_70] : memref<48x8xf32, #tpu.memory_space<vmem>>, vector<30x8xf32>
    %c8_71 = arith.constant 8 : index
    %c32 = arith.constant 32 : index
    %79 = vector.load %arg15[%c8_71, %c32] : memref<48x64xf32, #tpu.memory_space<vmem>>, vector<30x8xf32>
    tpu.vector_store %arg15[%c8_71, %c32], %78 {strides = array<i32>} : memref<48x64xf32, #tpu.memory_space<vmem>>, vector<30x8xf32>,
    %c9 = arith.constant 9 : index
    %c0_72 = arith.constant 0 : index
    %80 = vector.load %arg14[%c9, %c0_72] : memref<48x8xf32, #tpu.memory_space<vmem>>, vector<30x8xf32>
    %c8_73 = arith.constant 8 : index
    %c40 = arith.constant 40 : index
    %81 = vector.load %arg15[%c8_73, %c40] : memref<48x64xf32, #tpu.memory_space<vmem>>, vector<30x8xf32>
    tpu.vector_store %arg15[%c8_73, %c40], %80 {strides = array<i32>} : memref<48x64xf32, #tpu.memory_space<vmem>>, vector<30x8xf32>,
    %c10 = arith.constant 10 : index
    %c0_74 = arith.constant 0 : index
    %82 = vector.load %arg14[%c10, %c0_74] : memref<48x8xf32, #tpu.memory_space<vmem>>, vector<30x8xf32>
    %c8_75 = arith.constant 8 : index
    %c48 = arith.constant 48 : index
    %83 = vector.load %arg15[%c8_75, %c48] : memref<48x64xf32, #tpu.memory_space<vmem>>, vector<30x8xf32>
    tpu.vector_store %arg15[%c8_75, %c48], %82 {strides = array<i32>} : memref<48x64xf32, #tpu.memory_space<vmem>>, vector<30x8xf32>,
    %c11 = arith.constant 11 : index
    %c0_76 = arith.constant 0 : index
    %84 = vector.load %arg14[%c11, %c0_76] : memref<48x8xf32, #tpu.memory_space<vmem>>, vector<30x8xf32>
    %c8_77 = arith.constant 8 : index
    %c56 = arith.constant 56 : index
    %85 = vector.load %arg15[%c8_77, %c56] : memref<48x64xf32, #tpu.memory_space<vmem>>, vector<30x8xf32>
    tpu.vector_store %arg15[%c8_77, %c56], %84 {strides = array<i32>} : memref<48x64xf32, #tpu.memory_space<vmem>>, vector<30x8xf32>,
    %c0_78 = arith.constant 0 : index
    %c0_79 = arith.constant 0 : index
    %86 = vector.load %arg15[%c0_78, %c0_79] : memref<48x64xf32, #tpu.memory_space<vmem>>, vector<48x64xf32>
    %c0_80 = arith.constant 0 : index
    %c0_81 = arith.constant 0 : index
    %87 = vector.load %arg5[%c0_80, %c0_81] : memref<64x16xf32, #tpu.memory_space<vmem>>, vector<64x16xf32>
    %cst_82 = arith.constant dense<0.000000e+00> : vector<48x16xf32>
    %88 = tpu.matmul %86, %87, %cst_82 {dimension_numbers = #tpu.dot_dimension_numbers<[1], [0], [0], [1], [0, 0, 1, 1], [], []>} : vector<48x64xf32>, vector<64x16xf32>, vector<48x16xf32> -> vector<48x16xf32>
    %c0_83 = arith.constant 0 : index
    %c0_84 = arith.constant 0 : index
    %89 = vector.load %arg6[%c0_83, %c0_84] : memref<1x16xf32, #tpu.memory_space<vmem>>, vector<1x16xf32>
    %90 = vector.broadcast %89 : vector<1x16xf32> to vector<48x16xf32>
    %91 = arith.mulf %88, %90 : vector<48x16xf32>
    %c0_85 = arith.constant 0 : index
    %c0_86 = arith.constant 0 : index
    %92 = vector.load %arg7[%c0_85, %c0_86] : memref<1x16xf32, #tpu.memory_space<vmem>>, vector<1x16xf32>
    %93 = vector.broadcast %92 : vector<1x16xf32> to vector<48x16xf32>
    %94 = arith.addf %91, %93 : vector<48x16xf32>
    %cst_87 = arith.constant 0.000000e+00 : f32
    %95 = vector.broadcast %cst_87 : f32 to vector<48x16xf32>
    %96 = arith.maximumf %94, %95 : vector<48x16xf32>
    %97 = tpu.iota {dimensions = array<i32: 0>} : vector<48x1xi32>
    %c8_i32_88 = arith.constant 8 : i32
    %98 = vector.broadcast %c8_i32_88 : i32 to vector<48x1xi32>
    %99 = arith.cmpi sge, %97, %98 : vector<48x1xi32>
    %c8_i32_89 = arith.constant 8 : i32
    %100 = vector.broadcast %c8_i32_89 : i32 to vector<48x1xi32>
    %101 = arith.subi %97, %100 : vector<48x1xi32>
    %c20_i32 = arith.constant 20 : i32
    %c0_i32_90 = arith.constant 0 : i32
    %102 = arith.cmpi eq, %c20_i32, %c0_i32_90 : i32
    %c1_i32_91 = arith.constant 1 : i32
    %103 = arith.select %102, %c1_i32_91, %c20_i32 : i32
    %104 = vector.broadcast %103 : i32 to vector<48x1xi32>
    %105 = arith.remsi %101, %104 : vector<48x1xi32>
    %c0_i32_92 = arith.constant 0 : i32
    %106 = vector.broadcast %c0_i32_92 : i32 to vector<48x1xi32>
    %107 = arith.cmpi ne, %105, %106 : vector<48x1xi32>
    %c0_i32_93 = arith.constant 0 : i32
    %108 = vector.broadcast %c0_i32_93 : i32 to vector<48x1xi32>
    %109 = arith.cmpi slt, %105, %108 : vector<48x1xi32>
    %c0_i32_94 = arith.constant 0 : i32
    %110 = arith.cmpi slt, %103, %c0_i32_94 : i32
    %111 = vector.broadcast %110 : i1 to vector<48x1xi1>
    %112 = vector.broadcast %111 : vector<48x1xi1> to vector<48x1xi1>
    %113 = arith.xori %109, %112 : vector<48x1xi1>
    %114 = arith.andi %113, %107 : vector<48x1xi1>
    %115 = vector.broadcast %103 : i32 to vector<48x1xi32>
    %116 = arith.addi %105, %115 : vector<48x1xi32>
    %117 = arith.select %114, %116, %105 : vector<48x1xi1>, vector<48x1xi32>
    %c10_i32 = arith.constant 10 : i32
    %118 = vector.broadcast %c10_i32 : i32 to vector<48x1xi32>
    %119 = arith.cmpi slt, %117, %118 : vector<48x1xi32>
    %120 = arith.andi %99, %119 : vector<48x1xi1>
    %cst_95 = arith.constant 0.000000e+00 : f32
    %121 = vector.shape_cast %120 : vector<48x1xi1> to vector<48x1xi1>
    %122 = vector.broadcast %121 : vector<48x1xi1> to vector<48x16xi1>
    %123 = vector.broadcast %cst_95 : f32 to vector<48x16xf32>
    %124 = arith.select %122, %96, %123 : vector<48x16xi1>, vector<48x16xf32>
    %c0_96 = arith.constant 0 : index
    %c0_97 = arith.constant 0 : index
    %125 = vector.load %arg16[%c0_96, %c0_97] : memref<48x16xf32, #tpu.memory_space<vmem>>, vector<48x16xf32>
    tpu.vector_store %arg16[%c0_96, %c0_97], %124 {strides = array<i32>} : memref<48x16xf32, #tpu.memory_space<vmem>>, vector<48x16xf32>,
    %c7_98 = arith.constant 7 : index
    %c0_99 = arith.constant 0 : index
    %126 = tpu.strided_load %arg16[%c7_98, %c0_99] {strides = array<i32: 2, 1>} : memref<48x16xf32, #tpu.memory_space<vmem>>, vector<20x16xf32>
    %c8_100 = arith.constant 8 : index
    %c0_101 = arith.constant 0 : index
    %127 = tpu.strided_load %arg16[%c8_100, %c0_101] {strides = array<i32: 2, 1>} : memref<48x16xf32, #tpu.memory_space<vmem>>, vector<20x16xf32>
    %128 = arith.maximumf %126, %127 : vector<20x16xf32>
    %cst_102 = arith.constant 0.000000e+00 : f32
    %129 = vector.broadcast %cst_102 : f32 to vector<8x16xf32>
    %c0_103 = arith.constant 0 : index
    %c0_104 = arith.constant 0 : index
    %130 = vector.load %arg17[%c0_103, %c0_104] : memref<28x16xf32, #tpu.memory_space<vmem>>, vector<8x16xf32>
    tpu.vector_store %arg17[%c0_103, %c0_104], %129 {strides = array<i32>} : memref<28x16xf32, #tpu.memory_space<vmem>>, vector<8x16xf32>,
    %c8_105 = arith.constant 8 : index
    %c0_106 = arith.constant 0 : index
    %131 = vector.load %arg17[%c8_105, %c0_106] : memref<28x16xf32, #tpu.memory_space<vmem>>, vector<20x16xf32>
    tpu.vector_store %arg17[%c8_105, %c0_106], %128 {strides = array<i32>} : memref<28x16xf32, #tpu.memory_space<vmem>>, vector<20x16xf32>,
    %cst_107 = arith.constant 0.000000e+00 : f32
    %132 = vector.broadcast %cst_107 : f32 to vector<8x128xf32>
    %c0_108 = arith.constant 0 : index
    %c0_109 = arith.constant 0 : index
    %133 = vector.load %arg18[%c0_108, %c0_109] : memref<28x128xf32, #tpu.memory_space<vmem>>, vector<8x128xf32>
    tpu.vector_store %arg18[%c0_108, %c0_109], %132 {strides = array<i32>} : memref<28x128xf32, #tpu.memory_space<vmem>>, vector<8x128xf32>,
    %cst_110 = arith.constant 0.000000e+00 : f32
    %134 = vector.broadcast %cst_110 : f32 to vector<3x128xf32>
    %c25 = arith.constant 25 : index
    %c0_111 = arith.constant 0 : index
    %135 = vector.load %arg18[%c25, %c0_111] : memref<28x128xf32, #tpu.memory_space<vmem>>, vector<3x128xf32>
    tpu.vector_store %arg18[%c25, %c0_111], %134 {strides = array<i32>} : memref<28x128xf32, #tpu.memory_space<vmem>>, vector<3x128xf32>,
    %c4_112 = arith.constant 4 : index
    %c0_113 = arith.constant 0 : index
    %136 = vector.load %arg17[%c4_112, %c0_113] : memref<28x16xf32, #tpu.memory_space<vmem>>, vector<17x16xf32>
    %c8_114 = arith.constant 8 : index
    %c0_115 = arith.constant 0 : index
    %137 = vector.load %arg18[%c8_114, %c0_115] : memref<28x128xf32, #tpu.memory_space<vmem>>, vector<17x16xf32>
    tpu.vector_store %arg18[%c8_114, %c0_115], %136 {strides = array<i32>} : memref<28x128xf32, #tpu.memory_space<vmem>>, vector<17x16xf32>,
    %c5_116 = arith.constant 5 : index
    %c0_117 = arith.constant 0 : index
    %138 = vector.load %arg17[%c5_116, %c0_117] : memref<28x16xf32, #tpu.memory_space<vmem>>, vector<17x16xf32>
    %c8_118 = arith.constant 8 : index
    %c16_119 = arith.constant 16 : index
    %139 = vector.load %arg18[%c8_118, %c16_119] : memref<28x128xf32, #tpu.memory_space<vmem>>, vector<17x16xf32>
    tpu.vector_store %arg18[%c8_118, %c16_119], %138 {strides = array<i32>} : memref<28x128xf32, #tpu.memory_space<vmem>>, vector<17x16xf32>,
    %c6_120 = arith.constant 6 : index
    %c0_121 = arith.constant 0 : index
    %140 = vector.load %arg17[%c6_120, %c0_121] : memref<28x16xf32, #tpu.memory_space<vmem>>, vector<17x16xf32>
    %c8_122 = arith.constant 8 : index
    %c32_123 = arith.constant 32 : index
    %141 = vector.load %arg18[%c8_122, %c32_123] : memref<28x128xf32, #tpu.memory_space<vmem>>, vector<17x16xf32>
    tpu.vector_store %arg18[%c8_122, %c32_123], %140 {strides = array<i32>} : memref<28x128xf32, #tpu.memory_space<vmem>>, vector<17x16xf32>,
    %c7_124 = arith.constant 7 : index
    %c0_125 = arith.constant 0 : index
    %142 = vector.load %arg17[%c7_124, %c0_125] : memref<28x16xf32, #tpu.memory_space<vmem>>, vector<17x16xf32>
    %c8_126 = arith.constant 8 : index
    %c48_127 = arith.constant 48 : index
    %143 = vector.load %arg18[%c8_126, %c48_127] : memref<28x128xf32, #tpu.memory_space<vmem>>, vector<17x16xf32>
    tpu.vector_store %arg18[%c8_126, %c48_127], %142 {strides = array<i32>} : memref<28x128xf32, #tpu.memory_space<vmem>>, vector<17x16xf32>,
    %c8_128 = arith.constant 8 : index
    %c0_129 = arith.constant 0 : index
    %144 = vector.load %arg17[%c8_128, %c0_129] : memref<28x16xf32, #tpu.memory_space<vmem>>, vector<17x16xf32>
    %c8_130 = arith.constant 8 : index
    %c64 = arith.constant 64 : index
    %145 = vector.load %arg18[%c8_130, %c64] : memref<28x128xf32, #tpu.memory_space<vmem>>, vector<17x16xf32>
    tpu.vector_store %arg18[%c8_130, %c64], %144 {strides = array<i32>} : memref<28x128xf32, #tpu.memory_space<vmem>>, vector<17x16xf32>,
    %c9_131 = arith.constant 9 : index
    %c0_132 = arith.constant 0 : index
    %146 = vector.load %arg17[%c9_131, %c0_132] : memref<28x16xf32, #tpu.memory_space<vmem>>, vector<17x16xf32>
    %c8_133 = arith.constant 8 : index
    %c80 = arith.constant 80 : index
    %147 = vector.load %arg18[%c8_133, %c80] : memref<28x128xf32, #tpu.memory_space<vmem>>, vector<17x16xf32>
    tpu.vector_store %arg18[%c8_133, %c80], %146 {strides = array<i32>} : memref<28x128xf32, #tpu.memory_space<vmem>>, vector<17x16xf32>,
    %c10_134 = arith.constant 10 : index
    %c0_135 = arith.constant 0 : index
    %148 = vector.load %arg17[%c10_134, %c0_135] : memref<28x16xf32, #tpu.memory_space<vmem>>, vector<17x16xf32>
    %c8_136 = arith.constant 8 : index
    %c96 = arith.constant 96 : index
    %149 = vector.load %arg18[%c8_136, %c96] : memref<28x128xf32, #tpu.memory_space<vmem>>, vector<17x16xf32>
    tpu.vector_store %arg18[%c8_136, %c96], %148 {strides = array<i32>} : memref<28x128xf32, #tpu.memory_space<vmem>>, vector<17x16xf32>,
    %c11_137 = arith.constant 11 : index
    %c0_138 = arith.constant 0 : index
    %150 = vector.load %arg17[%c11_137, %c0_138] : memref<28x16xf32, #tpu.memory_space<vmem>>, vector<17x16xf32>
    %c8_139 = arith.constant 8 : index
    %c112 = arith.constant 112 : index
    %151 = vector.load %arg18[%c8_139, %c112] : memref<28x128xf32, #tpu.memory_space<vmem>>, vector<17x16xf32>
    tpu.vector_store %arg18[%c8_139, %c112], %150 {strides = array<i32>} : memref<28x128xf32, #tpu.memory_space<vmem>>, vector<17x16xf32>,
    %c0_140 = arith.constant 0 : index
    %c0_141 = arith.constant 0 : index
    %152 = vector.load %arg18[%c0_140, %c0_141] : memref<28x128xf32, #tpu.memory_space<vmem>>, vector<28x128xf32>
    %c0_142 = arith.constant 0 : index
    %c0_143 = arith.constant 0 : index
    %153 = vector.load %arg8[%c0_142, %c0_143] : memref<128x16xf32, #tpu.memory_space<vmem>>, vector<128x16xf32>
    %cst_144 = arith.constant dense<0.000000e+00> : vector<28x16xf32>
    %154 = tpu.matmul %152, %153, %cst_144 {dimension_numbers = #tpu.dot_dimension_numbers<[1], [0], [0], [1], [0, 0, 1, 1], [], []>} : vector<28x128xf32>, vector<128x16xf32>, vector<28x16xf32> -> vector<28x16xf32>
    %c0_145 = arith.constant 0 : index
    %c0_146 = arith.constant 0 : index
    %155 = vector.load %arg9[%c0_145, %c0_146] : memref<1x16xf32, #tpu.memory_space<vmem>>, vector<1x16xf32>
    %156 = vector.broadcast %155 : vector<1x16xf32> to vector<28x16xf32>
    %157 = arith.mulf %154, %156 : vector<28x16xf32>
    %c0_147 = arith.constant 0 : index
    %c0_148 = arith.constant 0 : index
    %158 = vector.load %arg10[%c0_147, %c0_148] : memref<1x16xf32, #tpu.memory_space<vmem>>, vector<1x16xf32>
    %159 = vector.broadcast %158 : vector<1x16xf32> to vector<28x16xf32>
    %160 = arith.addf %157, %159 : vector<28x16xf32>
    %cst_149 = arith.constant 0.000000e+00 : f32
    %161 = vector.broadcast %cst_149 : f32 to vector<28x16xf32>
    %162 = arith.maximumf %160, %161 : vector<28x16xf32>
    %163 = tpu.iota {dimensions = array<i32: 0>} : vector<28x1xi32>
    %c8_i32_150 = arith.constant 8 : i32
    %164 = vector.broadcast %c8_i32_150 : i32 to vector<28x1xi32>
    %165 = arith.cmpi sge, %163, %164 : vector<28x1xi32>
    %c8_i32_151 = arith.constant 8 : i32
    %166 = vector.broadcast %c8_i32_151 : i32 to vector<28x1xi32>
    %167 = arith.subi %163, %166 : vector<28x1xi32>
    %c10_i32_152 = arith.constant 10 : i32
    %c0_i32_153 = arith.constant 0 : i32
    %168 = arith.cmpi eq, %c10_i32_152, %c0_i32_153 : i32
    %c1_i32_154 = arith.constant 1 : i32
    %169 = arith.select %168, %c1_i32_154, %c10_i32_152 : i32
    %170 = vector.broadcast %169 : i32 to vector<28x1xi32>
    %171 = arith.remsi %167, %170 : vector<28x1xi32>
    %c0_i32_155 = arith.constant 0 : i32
    %172 = vector.broadcast %c0_i32_155 : i32 to vector<28x1xi32>
    %173 = arith.cmpi ne, %171, %172 : vector<28x1xi32>
    %c0_i32_156 = arith.constant 0 : i32
    %174 = vector.broadcast %c0_i32_156 : i32 to vector<28x1xi32>
    %175 = arith.cmpi slt, %171, %174 : vector<28x1xi32>
    %c0_i32_157 = arith.constant 0 : i32
    %176 = arith.cmpi slt, %169, %c0_i32_157 : i32
    %177 = vector.broadcast %176 : i1 to vector<28x1xi1>
    %178 = vector.broadcast %177 : vector<28x1xi1> to vector<28x1xi1>
    %179 = arith.xori %175, %178 : vector<28x1xi1>
    %180 = arith.andi %179, %173 : vector<28x1xi1>
    %181 = vector.broadcast %169 : i32 to vector<28x1xi32>
    %182 = arith.addi %171, %181 : vector<28x1xi32>
    %183 = arith.select %180, %182, %171 : vector<28x1xi1>, vector<28x1xi32>
    %c7_i32 = arith.constant 7 : i32
    %184 = vector.broadcast %c7_i32 : i32 to vector<28x1xi32>
    %185 = arith.cmpi slt, %183, %184 : vector<28x1xi32>
    %186 = arith.andi %165, %185 : vector<28x1xi1>
    %cst_158 = arith.constant 0.000000e+00 : f32
    %187 = vector.shape_cast %186 : vector<28x1xi1> to vector<28x1xi1>
    %188 = vector.broadcast %187 : vector<28x1xi1> to vector<28x16xi1>
    %189 = vector.broadcast %cst_158 : f32 to vector<28x16xf32>
    %190 = arith.select %188, %162, %189 : vector<28x16xi1>, vector<28x16xf32>
    %c0_159 = arith.constant 0 : index
    %c0_160 = arith.constant 0 : index
    %191 = vector.load %arg19[%c0_159, %c0_160] : memref<28x16xf32, #tpu.memory_space<vmem>>, vector<28x16xf32>
    tpu.vector_store %arg19[%c0_159, %c0_160], %190 {strides = array<i32>} : memref<28x16xf32, #tpu.memory_space<vmem>>, vector<28x16xf32>,
    %c7_161 = arith.constant 7 : index
    %c0_162 = arith.constant 0 : index
    %192 = tpu.strided_load %arg19[%c7_161, %c0_162] {strides = array<i32: 2, 1>} : memref<28x16xf32, #tpu.memory_space<vmem>>, vector<10x16xf32>
    %c8_163 = arith.constant 8 : index
    %c0_164 = arith.constant 0 : index
    %193 = tpu.strided_load %arg19[%c8_163, %c0_164] {strides = array<i32: 2, 1>} : memref<28x16xf32, #tpu.memory_space<vmem>>, vector<10x16xf32>
    %194 = arith.maximumf %192, %193 : vector<10x16xf32>
    %c0_165 = arith.constant 0 : index
    %c0_166 = arith.constant 0 : index
    %195 = vector.load %arg11[%c0_165, %c0_166] : memref<10x16xf32, #tpu.memory_space<vmem>>, vector<10x16xf32>
    tpu.vector_store %arg11[%c0_165, %c0_166], %194 {strides = array<i32>} : memref<10x16xf32, #tpu.memory_space<vmem>>, vector<10x16xf32>,
    return
  }
  func.func @transform_0(%arg0: i32) -> (i32, i32) {
    %c0_i32 = arith.constant 0 : i32
    %c0_i32_0 = arith.constant 0 : i32
    return %arg0, %c0_i32 : i32, i32
  }
  func.func @transform_1(%arg0: i32) -> (i32, i32) {
    %c0_i32 = arith.constant 0 : i32
    %c0_i32_0 = arith.constant 0 : i32
    %c0_i32_1 = arith.constant 0 : i32
    return %c0_i32, %c0_i32_0 : i32, i32
  }
  func.func @transform_2(%arg0: i32) -> (i32, i32) {
    %c0_i32 = arith.constant 0 : i32
    %c0_i32_0 = arith.constant 0 : i32
    %c0_i32_1 = arith.constant 0 : i32
    return %c0_i32, %c0_i32_0 : i32, i32
  }
  func.func @transform_3(%arg0: i32) -> (i32, i32) {
    %c0_i32 = arith.constant 0 : i32
    %c0_i32_0 = arith.constant 0 : i32
    %c0_i32_1 = arith.constant 0 : i32
    return %c0_i32, %c0_i32_0 : i32, i32
  }
  func.func @transform_4(%arg0: i32) -> (i32, i32) {
    %c0_i32 = arith.constant 0 : i32
    %c0_i32_0 = arith.constant 0 : i32
    %c0_i32_1 = arith.constant 0 : i32
    return %c0_i32, %c0_i32_0 : i32, i32
  }
  func.func @transform_5(%arg0: i32) -> (i32, i32) {
    %c0_i32 = arith.constant 0 : i32
    %c0_i32_0 = arith.constant 0 : i32
    %c0_i32_1 = arith.constant 0 : i32
    return %c0_i32, %c0_i32_0 : i32, i32
  }
  func.func @transform_6(%arg0: i32) -> (i32, i32) {
    %c0_i32 = arith.constant 0 : i32
    %c0_i32_0 = arith.constant 0 : i32
    %c0_i32_1 = arith.constant 0 : i32
    return %c0_i32, %c0_i32_0 : i32, i32
  }
  func.func @transform_7(%arg0: i32) -> (i32, i32) {
    %c0_i32 = arith.constant 0 : i32
    %c0_i32_0 = arith.constant 0 : i32
    %c0_i32_1 = arith.constant 0 : i32
    return %c0_i32, %c0_i32_0 : i32, i32
  }
  func.func @transform_8(%arg0: i32) -> (i32, i32) {
    %c0_i32 = arith.constant 0 : i32
    %c0_i32_0 = arith.constant 0 : i32
    %c0_i32_1 = arith.constant 0 : i32
    return %c0_i32, %c0_i32_0 : i32, i32
  }
  func.func @transform_9(%arg0: i32) -> (i32, i32) {
    %c0_i32 = arith.constant 0 : i32
    %c0_i32_0 = arith.constant 0 : i32
    %c0_i32_1 = arith.constant 0 : i32
    return %c0_i32, %c0_i32_0 : i32, i32
  }
  func.func @transform_10(%arg0: i32) -> (i32, i32) {
    %c0_i32 = arith.constant 0 : i32
    %c0_i32_0 = arith.constant 0 : i32
    return %arg0, %c0_i32 : i32, i32
  }
}

</mosaic_0001>

<bundles_post_ra>
// kernel: tpu_custom_call.1
= control target key start
LH: loop header
LB: loop body
LE: loop exit
PB: predicated region body
PF: predicated region fallthrough
CT: control target
= control target key end

     0   :  { %s2142_s17 = smov 12   ;;  %s2143_s18 = smov 4   ;;  %vm36_vm0 = vcmask 261120   ;;  %v2146_v6 = vmov 0.0|0.0   ;;  %v2147_v7 = vmov 0.0   ;;  %vm2148_vm1 = vmmov 0   ;;  %s2979_s0 = inlined_call_operand.vmem [shape: f32[80,4], index: 0, kind: input, shape index: {}]   ;;  %s2980_s1 = inlined_call_operand.vmem [shape: f32[32,8], index: 1, kind: input, shape index: {}]   ;;  %s2981_s2 = inlined_call_operand.vmem [shape: f32[1,8], index: 2, kind: input, shape index: {}]   ;;  %s2982_s3 = inlined_call_operand.vmem [shape: f32[1,8], index: 3, kind: input, shape index: {}]   ;;  %s2983_s4 = inlined_call_operand.vmem [shape: f32[64,16], index: 4, kind: input, shape index: {}]   ;;  %s2984_s5 = inlined_call_operand.vmem [shape: f32[1,16], index: 5, kind: input, shape index: {}]   ;;  %s2985_s6 = inlined_call_operand.vmem [shape: f32[1,16], index: 6, kind: input, shape index: {}]   ;;  %s2986_s7 = inlined_call_operand.vmem [shape: f32[128,16], index: 7, kind: input, shape index: {}]   ;;  %s2987_s8 = inlined_call_operand.vmem [shape: f32[1,16], index: 8, kind: input, shape index: {}]   ;;  %s2988_s9 = inlined_call_operand.vmem [shape: f32[1,16], index: 9, kind: input, shape index: {}]   ;;  %s2989_s10 = inlined_call_operand.hbm [shape: f32[10,16], index: 10, kind: output, shape index: {}]  }
   0x1   :  { %v160_v0 = vld [vmem:[%s2979_s0 + $0x3] sm:$0xff]  ;;  %s2144_s23 = smov 16   ;;  %s2145_s24 = smov 8   ;;  %2023 = vmatprep.subr.bf16.mxu0 %v2146_v6  ;;  %1440 = vst [vmem:[#allocation8] sm:$0xff] %v2147_v7  ;;  %1441 = vst [vmem:[#allocation8 + $0x19] sm:$0x7] %v2147_v7  ;;  %1927 = vmatprep.mubr.msk.f32.mxu0 %vm2148_vm1, %v2147_v7 }
   0x2   :  { %v60_v1 = vld [vmem:[%s2979_s0 + $0x1] sm:$0xff]  ;;  %176 = vrot.lane.b32.xlu1 %v160_v0, %s2142_s17  ;;  %v61_v5 = vld [vmem:[%s2979_s0 + $0x9] sm:$0xff]  ;;  %37 = vst.msk [vmem:[#allocation2] sm:$0xff] %vm36_vm0, %v2147_v7  ;;  %38 = vst.msk [vmem:[#allocation2 + $0x41] sm:$0xff] %vm36_vm0, %v2147_v7  ;;  %s2149_s29 = smov 20   ;;  %s2150_s14 = smov 24  }
   0x3   :  { %76 = vrot.lane.b32.xlu0 %v60_v1, %s2143_s18  ;;  %v210_v2 = vld [vmem:[%s2979_s0 + $0x4] sm:$0xff]  ;;  %39 = vst.msk [vmem:[#allocation2 + $0x49] sm:$0xff] %vm36_vm0, %v2147_v7  ;;  %s2151_s21 = smov 28   ;;  %v62_v12 = vld [vmem:[%s2979_s0 + $0x11] sm:$0xff]  ;;  %vm50_vm2 = vcmask 31744  }
   0x4   :  { %v110_v3 = vld [vmem:[%s2979_s0 + $0x2] sm:$0xff]  ;;  %v111_v9 = vld [vmem:[%s2979_s0 + $0xa] sm:$0xff]  ;;  %v112_v14 = vld [vmem:[%s2979_s0 + $0x12] sm:$0xff] }
   0x5   :  { %v260_v4 = vld [vmem:[%s2979_s0 + $0x5] sm:$0xff]  ;;  %v261_v15 = vld [vmem:[%s2979_s0 + $0xd] sm:$0xff]  ;;  %v424_v22 = vld [vmem:[%s2980_s1 + $0x18] sm:$0xff] }
   0x6   :  { %226 = vrot.lane.b32.xlu1 %v210_v2, %s2144_s23  ;;  %v310_v8 = vld [vmem:[%s2979_s0 + $0x6] sm:$0xff]  ;;  %v423_v21 = vld [vmem:[%s2980_s1 + $0x10] sm:$0xff]  ;;  %v45_v24 = vld [vmem:[%s2979_s0 + $0x18] sm:$0xff] }
   0x7   :  { %126 = vrot.lane.b32.xlu0 %v110_v3, %s2145_s24  ;;  %v360_v10 = vld [vmem:[%s2979_s0 + $0x7] sm:$0xff]  ;;  %v44_v23 = vld [vmem:[%s2979_s0 + $0x10] sm:$0xff] }
   0x8   :  { %v161_v11 = vld [vmem:[%s2979_s0 + $0xb] sm:$0xff]  ;;  %v42_v16 = vld [vmem:[%s2979_s0] sm:$0xff]  ;;  %53 = vst.msk [vmem:[#allocation2 + $0x18] sm:$0xff] %vm50_vm2, %v44_v23 }
   0x9   :  { %v211_v13 = vld [vmem:[%s2979_s0 + $0xc] sm:$0xff]  ;;  %51 = vst.msk [vmem:[#allocation2 + $0x8] sm:$0xff] %vm50_vm2, %v42_v16  ;;  %v421_v18 = vld [vmem:[%s2980_s1] sm:$0xff] }
   0xa   :  { %276 = vrot.lane.b32.xlu1 %v260_v4, %s2149_s29  ;;  %v43_v17 = vld [vmem:[%s2979_s0 + $0x8] sm:$0xff] }
   0xb   :  { %78 = vrot.lane.b32.xlu0 %v61_v5, %s2143_s18  ;;  %52 = vst.msk [vmem:[#allocation2 + $0x10] sm:$0xff] %vm50_vm2, %v43_v17  ;;  %v422_v19 = vld [vmem:[%s2980_s1 + $0x8] sm:$0xff] }
   0xc   :  { %v2024_v20 = vpack.c.bf16 %v422_v19, %v421_v18 }
   0xe   :  { %326 = vrot.lane.b32.xlu1 %v310_v8, %s2150_s14 }
   0xf   :  { %128 = vrot.lane.b32.xlu0 %v111_v9, %s2145_s24 }
  0x12   :  { %376 = vrot.lane.b32.xlu1 %v360_v10, %s2151_s21 }
  0x13   :  { %178 = vrot.lane.b32.xlu0 %v161_v11, %s2142_s17 }
  0x16   :  { %80 = vrot.lane.b32.xlu1 %v62_v12, %s2143_s18 }
  0x17   :  { %228 = vrot.lane.b32.xlu0 %v211_v13, %s2144_s23 }
  0x18   :  { %15 = vsyncpa [#allocation11], 0  ;;  %2025 = vmatpush3.bf16.msra.mxu0 %v2024_v20  ;;  %v2027_v25 = vpack.c.bf16 %v424_v22, %v423_v21  ;;  %54 = vst.msk [vmem:[#allocation2 + $0x20] sm:$0xff] %vm50_vm2, %v45_v24  ;;  %v162_v26 = vld [vmem:[%s2979_s0 + $0x13] sm:$0xff]  ;;  %v410_v28 = vld [vmem:[#allocation2] sm:$0xff]  ;;  %vm58_vm3 = vcmask 24576  }
  0x19   :  { %v311_v27 = vld [vmem:[%s2979_s0 + $0xe] sm:$0xff]  ;;  %2026 = vmatprep.subr.bf16.mxu0 %v2146_v6  ;;  %v63_v32 = vld [vmem:[%s2979_s0 + $0x19] sm:$0xff]  ;;  %v64_v38 = vld [vmem:[%s2979_s0 + $0x21] sm:$0xff]  ;;  %vm40_vm4 = vcmask 260096   ;;  %vm100_vm5 = vcmask 64544   ;;  %vm150_vm6 = vcmask 97344  }
  0x1a   :  { %130 = vrot.lane.b32.xlu1 %v112_v14, %s2145_s24  ;;  %v212_v29 = vld [vmem:[%s2979_s0 + $0x14] sm:$0xff]  ;;  %v46_v33 = vld [vmem:[%s2979_s0 + $0x20] sm:$0xff]  ;;  %v47_v42 = vld [vmem:[%s2979_s0 + $0x28] sm:$0xff]  ;;  %41 = vst.msk [vmem:[#allocation2 + $0x51] sm:$0x7f] %vm40_vm4, %v2147_v7  ;;  %vm200_vm7 = vcmask 130144  }
  0x1b   :  { %278 = vrot.lane.b32.xlu0 %v261_v15, %s2149_s29  ;;  %v361_v30 = vld [vmem:[%s2979_s0 + $0xf] sm:$0xff]  ;;  %55 = vst.msk [vmem:[#allocation2 + $0x28] sm:$0xff] %vm50_vm2, %v46_v33  ;;  %v113_v35 = vld [vmem:[%s2979_s0 + $0x1a] sm:$0xff]  ;;  %v114_v40 = vld [vmem:[%s2979_s0 + $0x22] sm:$0xff]  ;;  %vm250_vm8 = vcmask 162944   ;;  %vm300_vm9 = vcmask 195744  }
  0x1c   :  { %2028 = vmatpush3.bf16.msra.mxu0 %v2027_v25  ;;  %v262_v31 = vld [vmem:[%s2979_s0 + $0x15] sm:$0xff]  ;;  %v263_v41 = vld [vmem:[%s2979_s0 + $0x1d] sm:$0xff]  ;;  %56 = vst.msk [vmem:[#allocation2 + $0x30] sm:$0xff] %vm50_vm2, %v47_v42  ;;  %v264_v47 = vld [vmem:[%s2979_s0 + $0x25] sm:$0xff]  ;;  %vm350_vm10 = vcmask 228544   ;;  %vm400_vm11 = vcmask 261344  }
  0x1d   :  { %v312_v34 = vld [vmem:[%s2979_s0 + $0x16] sm:$0xff]  ;;  %v164_v43 = vld [vmem:[%s2979_s0 + $0x23] sm:$0xff]  ;;  %v165_v53 = vld [vmem:[%s2979_s0 + $0x2b] sm:$0xff]  ;;  %vm108_vm12 = vcmask 57376   ;;  %vm158_vm13 = vcmask 90176   ;;  %vm208_vm14 = vcmask 122976  }
  0x1e   :  { %180 = vrot.lane.b32.xlu1 %v162_v26, %s2142_s17  ;;  %v362_v36 = vld [vmem:[%s2979_s0 + $0x17] sm:$0xff]  ;;  %v214_v45 = vld [vmem:[%s2979_s0 + $0x24] sm:$0xff]  ;;  %v215_v55 = vld [vmem:[%s2979_s0 + $0x2c] sm:$0xff]  ;;  %vm258_vm15 = vcmask 155776   ;;  %vm408_vm4 = vcmask 254176   ;;  %s2156_s26 = smov 64  }
  0x1f   :  { %328 = vrot.lane.b32.xlu0 %v311_v27, %s2150_s14  ;;  %1928 = vmatmul.mubr.msk.f32.vlgmr.msra.gmra.mrb[0].mxu0 %vm36_vm0, %v410_v28  ;;  %v163_v37 = vld [vmem:[%s2979_s0 + $0x1b] sm:$0xff]  ;;  %v65_v48 = vld [vmem:[%s2979_s0 + $0x29] sm:$0xff]  ;;  %v66_v54 = vld [vmem:[%s2979_s0 + $0x31] sm:$0xff]  ;;  %s2157_s12 = smov 80   ;;  %s2158_s1 = smov 96  }
  0x20   :  { %1930 = vmatprep.mubr.msk.f32.mxu0 %vm2148_vm1, %v2147_v7  ;;  %v213_v39 = vld [vmem:[%s2979_s0 + $0x1c] sm:$0xff]  ;;  %v48_v49 = vld [vmem:[%s2979_s0 + $0x30] sm:$0xff]  ;;  %v314_v50 = vld [vmem:[%s2979_s0 + $0x26] sm:$0xff] }
  0x21   :  { %v313_v44 = vld [vmem:[%s2979_s0 + $0x1e] sm:$0xff]  ;;  %57 = vst.msk [vmem:[#allocation2 + $0x38] sm:$0xff] %vm50_vm2, %v48_v49  ;;  %v115_v51 = vld [vmem:[%s2979_s0 + $0x2a] sm:$0xff]  ;;  %v116_v56 = vld [vmem:[%s2979_s0 + $0x32] sm:$0xff]  ;;  %vm308_vm2 = vcmask 188576  }
  0x22   :  { %230 = vrot.lane.b32.xlu1 %v212_v29, %s2144_s23  ;;  %v363_v46 = vld [vmem:[%s2979_s0 + $0x1f] sm:$0xff]  ;;  %v364_v52 = vld [vmem:[%s2979_s0 + $0x27] sm:$0xff]  ;;  %v49_v58 = vld [vmem:[%s2979_s0 + $0x38] sm:$0x1] }
  0x23   :  { %378 = vrot.lane.b32.xlu0 %v361_v30, %s2151_s21  ;;  %v265_v57 = vld [vmem:[%s2979_s0 + $0x2d] sm:$0xff]  ;;  %59 = vst.msk [vmem:[#allocation2 + $0x40] sm:$0x1] %vm58_vm3, %v49_v58  ;;  %v266_v63 = vld [vmem:[%s2979_s0 + $0x35] sm:$0xff]  ;;  %v267_v6 = vld [vmem:[%s2979_s0 + $0x3d] sm:$0x1] }
  0x24   :  { %v166_v59 = vld [vmem:[%s2979_s0 + $0x33] sm:$0xff]  ;;  %v167_v4 = vld [vmem:[%s2979_s0 + $0x3b] sm:$0x1]  ;;  %v217_v5 = vld [vmem:[%s2979_s0 + $0x3c] sm:$0x1]  ;;  %vm358_vm3 = vcmask 221376  }
  0x25   :  { %v315_v60 = vld [vmem:[%s2979_s0 + $0x2e] sm:$0xff]  ;;  %v67_v0 = vld [vmem:[%s2979_s0 + $0x39] sm:$0x1]  ;;  %v117_v2 = vld [vmem:[%s2979_s0 + $0x3a] sm:$0x1] }
  0x26   :  { %280 = vrot.lane.b32.xlu1 %v262_v31, %s2149_s29  ;;  %v216_v61 = vld [vmem:[%s2979_s0 + $0x34] sm:$0xff]  ;;  %v317_v8 = vld [vmem:[%s2979_s0 + $0x3e] sm:$0x1]  ;;  %v367_v9 = vld [vmem:[%s2979_s0 + $0x3f] sm:$0x1] }
  0x27   :  { %82 = vrot.lane.b32.xlu0 %v63_v32, %s2143_s18  ;;  %v365_v62 = vld [vmem:[%s2979_s0 + $0x2f] sm:$0xff]  ;;  %v366_v3 = vld [vmem:[%s2979_s0 + $0x37] sm:$0xff] }
  0x28   :  { %v316_v1 = vld [vmem:[%s2979_s0 + $0x36] sm:$0xff]  ;;  %s2153_s0 = smov 48  }
  0x2a   :  { %330 = vrot.lane.b32.xlu1 %v312_v34, %s2150_s14 }
  0x2b   :  { %132 = vrot.lane.b32.xlu0 %v113_v35, %s2145_s24 }
  0x2e   :  { %380 = vrot.lane.b32.xlu1 %v362_v36, %s2151_s21 }
  0x2f   :  { %182 = vrot.lane.b32.xlu0 %v163_v37, %s2142_s17 }
  0x32   :  { %84 = vrot.lane.b32.xlu1 %v64_v38, %s2143_s18 }
  0x33   :  { %232 = vrot.lane.b32.xlu0 %v213_v39, %s2144_s23 }
  0x36   :  { %134 = vrot.lane.b32.xlu1 %v114_v40, %s2145_s24 }
  0x37   :  { %282 = vrot.lane.b32.xlu0 %v263_v41, %s2149_s29 }
  0x3a   :  { %184 = vrot.lane.b32.xlu1 %v164_v43, %s2142_s17 }
  0x3b   :  { %332 = vrot.lane.b32.xlu0 %v313_v44, %s2150_s14 }
  0x3e   :  { %234 = vrot.lane.b32.xlu1 %v214_v45, %s2144_s23 }
  0x3f   :  { %382 = vrot.lane.b32.xlu0 %v363_v46, %s2151_s21 }
  0x42   :  { %284 = vrot.lane.b32.xlu1 %v264_v47, %s2149_s29 }
  0x43   :  { %86 = vrot.lane.b32.xlu0 %v65_v48, %s2143_s18 }
  0x46   :  { %334 = vrot.lane.b32.xlu1 %v314_v50, %s2150_s14 }
  0x47   :  { %136 = vrot.lane.b32.xlu0 %v115_v51, %s2145_s24 }
  0x4a   :  { %384 = vrot.lane.b32.xlu1 %v364_v52, %s2151_s21 }
  0x4b   :  { %186 = vrot.lane.b32.xlu0 %v165_v53, %s2142_s17 }
  0x4e   :  { %88 = vrot.lane.b32.xlu1 %v66_v54, %s2143_s18 }
  0x4f   :  { %236 = vrot.lane.b32.xlu0 %v215_v55, %s2144_s23 }
  0x52   :  { %138 = vrot.lane.b32.xlu1 %v116_v56, %s2145_s24 }
  0x53   :  { %286 = vrot.lane.b32.xlu0 %v265_v57, %s2149_s29 }
  0x56   :  { %188 = vrot.lane.b32.xlu1 %v166_v59, %s2142_s17 }
  0x57   :  { %336 = vrot.lane.b32.xlu0 %v315_v60, %s2150_s14 }
  0x5a   :  { %238 = vrot.lane.b32.xlu1 %v216_v61, %s2144_s23 }
  0x5b   :  { %386 = vrot.lane.b32.xlu0 %v365_v62, %s2151_s21 }
  0x5e   :  { %288 = vrot.lane.b32.xlu1 %v266_v63, %s2149_s29 }
  0x5f   :  { %90 = vrot.lane.b32.xlu0 %v67_v0, %s2143_s18 }
  0x62   :  { %338 = vrot.lane.b32.xlu1 %v316_v1, %s2150_s14 }
  0x63   :  { %140 = vrot.lane.b32.xlu0 %v117_v2, %s2145_s24 }
  0x66   :  { %388 = vrot.lane.b32.xlu1 %v366_v3, %s2151_s21 }
  0x67   :  { %190 = vrot.lane.b32.xlu0 %v167_v4, %s2142_s17 }
  0x6a   :  { %290 = vrot.lane.b32.xlu1 %v267_v6, %s2149_s29  ;;  %s2154_s29 = smov 40  }
  0x6b   :  { %240 = vrot.lane.b32.xlu0 %v217_v5, %s2144_s23 }
  0x6e   :  { %390 = vrot.lane.b32.xlu1 %v367_v9, %s2151_s21 }
  0x6f   :  { %340 = vrot.lane.b32.xlu0 %v317_v8, %s2150_s14 }
  0x74   :  { %v177_v10 = vpop.permute.xlu1 %176 }
  0x75   :  { %v77_v11 = vpop.permute.xlu0 %76 }
  0x76   :  { %101 = vst.msk [vmem:[#allocation2 + $0x8] sm:$0xff] %vm100_vm5, %v77_v11  ;;  %v419_v11 = vld [vmem:[#allocation2 + $0x48] sm:$0xff] }
  0x78   :  { %v227_v12 = vpop.permute.xlu1 %226 }
  0x79   :  { %v127_v13 = vpop.permute.xlu0 %126 }
  0x7a   :  { %151 = vst.msk [vmem:[#allocation2 + $0x8] sm:$0xff] %vm150_vm6, %v127_v13 }
  0x7b   :  { %201 = vst.msk [vmem:[#allocation2 + $0x8] sm:$0xff] %vm200_vm7, %v177_v10 }
  0x7c   :  { %251 = vst.msk [vmem:[#allocation2 + $0x8] sm:$0xff] %vm250_vm8, %v227_v12  ;;  %v277_v14 = vpop.permute.xlu1 %276  ;;  %v420_v12 = vld [vmem:[#allocation2 + $0x50] sm:$0xff] }
  0x7d   :  { %v79_v15 = vpop.permute.xlu0 %78  ;;  %301 = vst.msk [vmem:[#allocation2 + $0x8] sm:$0xff] %vm300_vm9, %v277_v14 }
  0x7e   :  { %102 = vst.msk [vmem:[#allocation2 + $0x10] sm:$0xff] %vm100_vm5, %v79_v15  ;;  %v625_v15 = vlaneseq }
  0x80   :  { %v327_v16 = vpop.permute.xlu1 %326 }
  0x81   :  { %v129_v17 = vpop.permute.xlu0 %128  ;;  %351 = vst.msk [vmem:[#allocation2 + $0x8] sm:$0xff] %vm350_vm10, %v327_v16  ;;  %v2579_v16 = vshrl.u32 %v625_v15, 7 }
  0x82   :  { %152 = vst.msk [vmem:[#allocation2 + $0x10] sm:$0xff] %vm150_vm6, %v129_v17 }
  0x84   :  { %v377_v18 = vpop.permute.xlu1 %376 }
  0x85   :  { %v179_v19 = vpop.permute.xlu0 %178  ;;  %401 = vst.msk [vmem:[#allocation2 + $0x8] sm:$0xff] %vm400_vm11, %v377_v18  ;;  %v2582_v17 = vmul.u32.u64.low 3435973837, %v2579_v16  ;;  %v2583_v18 = vmul.u32.u64.high 3435973837, %v2579_v16, %v2582_v17 }
  0x86   :  { %202 = vst.msk [vmem:[#allocation2 + $0x10] sm:$0xff] %vm200_vm7, %v179_v19 }
  0x87   :  { %v675_v19 = vshrl.u32 %v2583_v18, 5 }
  0x88   :  { %v81_v20 = vpop.permute.xlu1 %80 }
  0x89   :  { %v229_v21 = vpop.permute.xlu0 %228  ;;  %103 = vst.msk [vmem:[#allocation2 + $0x18] sm:$0xff] %vm100_vm5, %v81_v20  ;;  %v628_v20 = vadd.s32 16, %v2579_v16 }
  0x8a   :  { %252 = vst.msk [vmem:[#allocation2 + $0x10] sm:$0xff] %vm250_vm8, %v229_v21  ;;  %v676_v21 = vmul.u32 40, %v675_v19 }
  0x8c   :  { %v131_v22 = vpop.permute.xlu1 %130  ;;  %v411_v24 = vld [vmem:[#allocation2 + $0x8] sm:$0xff] }
  0x8d   :  { %v279_v23 = vpop.permute.xlu0 %278  ;;  %153 = vst.msk [vmem:[#allocation2 + $0x18] sm:$0xff] %vm150_vm6, %v131_v22  ;;  %1931 = vmatmul.mubr.msk.f32.gmra.mrb[2].mxu0 %vm36_vm0, %v411_v24  ;;  %v2587_v22 = vadd.s32 4294967288, %v628_v20 }
  0x8e   :  { %302 = vst.msk [vmem:[#allocation2 + $0x10] sm:$0xff] %vm300_vm9, %v279_v23  ;;  %1933 = vmatprep.mubr.msk.f32.mxu0 %vm2148_vm1, %v2147_v7  ;;  %v677_v23 = vsub.s32 %v2579_v16, %v676_v21 }
  0x90   :  { %v181_v25 = vpop.permute.xlu1 %180 }
  0x91   :  { %v329_v26 = vpop.permute.xlu0 %328  ;;  %203 = vst.msk [vmem:[#allocation2 + $0x18] sm:$0xff] %vm200_vm7, %v181_v25  ;;  %v2591_v24 = vmul.u32.u64.low 3435973837, %v2587_v22  ;;  %v2592_v25 = vmul.u32.u64.high 3435973837, %v2587_v22, %v2591_v24 }
  0x92   :  { %352 = vst.msk [vmem:[#allocation2 + $0x10] sm:$0xff] %vm350_vm10, %v329_v26  ;;  %v629_v26 = vadd.s32 24, %v2579_v16 }
  0x94   :  { %v231_v27 = vpop.permute.xlu1 %230 }
  0x95   :  { %v379_v28 = vpop.permute.xlu0 %378  ;;  %253 = vst.msk [vmem:[#allocation2 + $0x18] sm:$0xff] %vm250_vm8, %v231_v27  ;;  %v813_v27 = vadd.s32 40, %v677_v23 }
  0x96   :  { %402 = vst.msk [vmem:[#allocation2 + $0x10] sm:$0xff] %vm400_vm11, %v379_v28  ;;  %v2598_v28 = vld [vmem:[%s2981_s2] ss:$0 sm:$0xff]  ;;  %s2152_s2 = smov 32  }
  0x98   :  { %v281_v29 = vpop.permute.xlu1 %280 }
  0x99   :  { %v83_v30 = vpop.permute.xlu0 %82  ;;  %303 = vst.msk [vmem:[#allocation2 + $0x18] sm:$0xff] %vm300_vm9, %v281_v29  ;;  %v686_v29 = vshrl.u32 %v2592_v25, 5 }
  0x9a   :  { %104 = vst.msk [vmem:[#allocation2 + $0x20] sm:$0xff] %vm100_vm5, %v83_v30  ;;  %v2601_v30 = vadd.s32 4294967288, %v629_v26 }
  0x9c   :  { %v331_v31 = vpop.permute.xlu1 %330 }
  0x9d   :  { %v133_v32 = vpop.permute.xlu0 %132  ;;  %v412_v33 = vld [vmem:[#allocation2 + $0x10] sm:$0xff]  ;;  %353 = vst.msk [vmem:[#allocation2 + $0x18] sm:$0xff] %vm350_vm10, %v331_v31 }
  0x9e   :  { %154 = vst.msk [vmem:[#allocation2 + $0x20] sm:$0xff] %vm150_vm6, %v133_v32  ;;  %1934 = vmatmul.mubr.msk.f32.gmra.mrb[4].mxu0 %vm36_vm0, %v412_v33  ;;  %v2606_v32 = vld [vmem:[%s2982_s3] ss:$0 sm:$0xff] }
  0x9f   :  { %1936 = vmatprep.mubr.msk.f32.mxu0 %vm2148_vm1, %v2147_v7 }
  0xa0   :  { %v381_v34 = vpop.permute.xlu1 %380 }
  0xa1   :  { %v183_v35 = vpop.permute.xlu0 %182  ;;  %403 = vst.msk [vmem:[#allocation2 + $0x18] sm:$0xff] %vm400_vm11, %v381_v34 }
  0xa2   :  { %204 = vst.msk [vmem:[#allocation2 + $0x20] sm:$0xff] %vm200_vm7, %v183_v35 }
  0xa4   :  { %v85_v36 = vpop.permute.xlu1 %84 }
  0xa5   :  { %v233_v37 = vpop.permute.xlu0 %232  ;;  %105 = vst.msk [vmem:[#allocation2 + $0x28] sm:$0xff] %vm100_vm5, %v85_v36 }
  0xa6   :  { %254 = vst.msk [vmem:[#allocation2 + $0x20] sm:$0xff] %vm250_vm8, %v233_v37  ;;  %v687_v37 = vmul.u32 40, %v686_v29 }
  0xa8   :  { %v135_v38 = vpop.permute.xlu1 %134  ;;  %v413_v40 = vld [vmem:[#allocation2 + $0x18] sm:$0xff] }
  0xa9   :  { %v283_v39 = vpop.permute.xlu0 %282  ;;  %155 = vst.msk [vmem:[#allocation2 + $0x28] sm:$0xff] %vm150_vm6, %v135_v38  ;;  %1937 = vmatmul.mubr.msk.f32.gmra.mrb[6].mxu0 %vm36_vm0, %v413_v40 }
  0xaa   :  { %304 = vst.msk [vmem:[#allocation2 + $0x20] sm:$0xff] %vm300_vm9, %v283_v39  ;;  %1939 = vmatprep.mubr.msk.f32.mxu0 %vm2148_vm1, %v2147_v7  ;;  %v2611_v38 = vmul.u32.u64.low 3435973837, %v2601_v30  ;;  %v2612_v39 = vmul.u32.u64.high 3435973837, %v2601_v30, %v2611_v38 }
  0xac   :  { %v185_v41 = vpop.permute.xlu1 %184 }
  0xad   :  { %v333_v42 = vpop.permute.xlu0 %332  ;;  %205 = vst.msk [vmem:[#allocation2 + $0x28] sm:$0xff] %vm200_vm7, %v185_v41 }
  0xae   :  { %354 = vst.msk [vmem:[#allocation2 + $0x20] sm:$0xff] %vm350_vm10, %v333_v42  ;;  %v688_v42 = vsub.s32 %v2587_v22, %v687_v37 }
  0xb0   :  { %v235_v43 = vpop.permute.xlu1 %234 }
  0xb1   :  { %v383_v44 = vpop.permute.xlu0 %382  ;;  %255 = vst.msk [vmem:[#allocation2 + $0x28] sm:$0xff] %vm250_vm8, %v235_v43  ;;  %v630_v43 = vadd.s32 32, %v2579_v16 }
  0xb2   :  { %404 = vst.msk [vmem:[#allocation2 + $0x20] sm:$0xff] %vm400_vm11, %v383_v44  ;;  %v697_v44 = vshrl.u32 %v2612_v39, 5 }
  0xb4   :  { %v285_v45 = vpop.permute.xlu1 %284 }
  0xb5   :  { %v87_v46 = vpop.permute.xlu0 %86  ;;  %305 = vst.msk [vmem:[#allocation2 + $0x28] sm:$0xff] %vm300_vm9, %v285_v45  ;;  %v814_v45 = vadd.s32 40, %v688_v42 }
  0xb6   :  { %106 = vst.msk [vmem:[#allocation2 + $0x30] sm:$0xff] %vm100_vm5, %v87_v46  ;;  %v2618_v46 = vadd.s32 4294967288, %v630_v43 }
  0xb8   :  { %v335_v47 = vpop.permute.xlu1 %334 }
  0xb9   :  { %v137_v48 = vpop.permute.xlu0 %136  ;;  %v414_v49 = vld [vmem:[#allocation2 + $0x20] sm:$0xff]  ;;  %355 = vst.msk [vmem:[#allocation2 + $0x28] sm:$0xff] %vm350_vm10, %v335_v47  ;;  %v698_v47 = vmul.u32 40, %v697_v44 }
  0xba   :  { %156 = vst.msk [vmem:[#allocation2 + $0x30] sm:$0xff] %vm150_vm6, %v137_v48  ;;  %1940 = vmatmul.mubr.msk.f32.gmra.mrb[8].mxu0 %vm36_vm0, %v414_v49 }
  0xbb   :  { %1942 = vmatprep.mubr.msk.f32.mxu0 %vm2148_vm1, %v2147_v7 }
  0xbc   :  { %v385_v50 = vpop.permute.xlu1 %384 }
  0xbd   :  { %v187_v51 = vpop.permute.xlu0 %186  ;;  %405 = vst.msk [vmem:[#allocation2 + $0x28] sm:$0xff] %vm400_vm11, %v385_v50 }
  0xbe   :  { %206 = vst.msk [vmem:[#allocation2 + $0x30] sm:$0xff] %vm200_vm7, %v187_v51 }
  0xc0   :  { %v89_v52 = vpop.permute.xlu1 %88 }
  0xc1   :  { %v237_v53 = vpop.permute.xlu0 %236  ;;  %107 = vst.msk [vmem:[#allocation2 + $0x38] sm:$0xff] %vm100_vm5, %v89_v52  ;;  %vm889_vm5 = vcmask 64512  }
  0xc2   :  { %256 = vst.msk [vmem:[#allocation2 + $0x30] sm:$0xff] %vm250_vm8, %v237_v53  ;;  %v2622_v52 = vmul.u32.u64.low 3435973837, %v2618_v46  ;;  %v2623_v53 = vmul.u32.u64.high 3435973837, %v2618_v46, %v2622_v52 }
  0xc3   :  { %890 = vst.msk [vmem:[#allocation3] sm:$0xff] %vm889_vm5, %v2147_v7  ;;  %926 = vst.msk [vmem:[#allocation4] sm:$0xff] %vm889_vm5, %v2147_v7 }
  0xc4   :  { %v139_v54 = vpop.permute.xlu1 %138  ;;  %v415_v56 = vld [vmem:[#allocation2 + $0x28] sm:$0xff] }
  0xc5   :  { %v287_v55 = vpop.permute.xlu0 %286  ;;  %157 = vst.msk [vmem:[#allocation2 + $0x38] sm:$0xff] %vm150_vm6, %v139_v54  ;;  %1943 = vmatmul.mubr.msk.f32.gmra.mrb[10].mxu0 %vm36_vm0, %v415_v56 }
  0xc6   :  { %306 = vst.msk [vmem:[#allocation2 + $0x30] sm:$0xff] %vm300_vm9, %v287_v55  ;;  %1945 = vmatprep.mubr.msk.f32.mxu0 %vm2148_vm1, %v2147_v7  ;;  %v699_v55 = vsub.s32 %v2601_v30, %v698_v47 }
  0xc8   :  { %v189_v57 = vpop.permute.xlu1 %188 }
  0xc9   :  { %v337_v58 = vpop.permute.xlu0 %336  ;;  %207 = vst.msk [vmem:[#allocation2 + $0x38] sm:$0xff] %vm200_vm7, %v189_v57 }
  0xca   :  { %356 = vst.msk [vmem:[#allocation2 + $0x30] sm:$0xff] %vm350_vm10, %v337_v58  ;;  %v631_v58 = vadd.s32 40, %v2579_v16 }
  0xcc   :  { %v239_v59 = vpop.permute.xlu1 %238 }
  0xcd   :  { %v387_v60 = vpop.permute.xlu0 %386  ;;  %257 = vst.msk [vmem:[#allocation2 + $0x38] sm:$0xff] %vm250_vm8, %v239_v59  ;;  %vm781_vm8 = vcmp.ne.s32.totalorder %v688_v42, 0  ;;  %v815_v59 = vadd.s32 40, %v699_v55 }
  0xce   :  { %406 = vst.msk [vmem:[#allocation2 + $0x30] sm:$0xff] %vm400_vm11, %v387_v60  ;;  %v708_v60 = vshrl.u32 %v2623_v53, 5 }
  0xd0   :  { %v289_v61 = vpop.permute.xlu1 %288 }
  0xd1   :  { %v91_v62 = vpop.permute.xlu0 %90  ;;  %307 = vst.msk [vmem:[#allocation2 + $0x38] sm:$0xff] %vm300_vm9, %v289_v61  ;;  %vm792_vm9 = vcmp.lt.s32.totalorder %v688_v42, 0  ;;  %v2630_v61 = vadd.s32 4294967288, %v631_v58 }
  0xd2   :  { %109 = vst.msk [vmem:[#allocation2 + $0x40] sm:$0x1] %vm108_vm12, %v91_v62  ;;  %vm782_vm12 = vcmp.ne.s32.totalorder %v699_v55, 0 }
  0xd4   :  { %v339_v63 = vpop.permute.xlu1 %338 }
  0xd5   :  { %v141_v0 = vpop.permute.xlu0 %140  ;;  %v416_v1 = vld [vmem:[#allocation2 + $0x30] sm:$0xff]  ;;  %357 = vst.msk [vmem:[#allocation2 + $0x38] sm:$0xff] %vm350_vm10, %v339_v63  ;;  %vm803_vm10 = vmand %vm792_vm9, %vm781_vm8 }
  0xd6   :  { %159 = vst.msk [vmem:[#allocation2 + $0x40] sm:$0x1] %vm158_vm13, %v141_v0  ;;  %1946 = vmatmul.mubr.msk.f32.gmra.mrb[12].mxu0 %vm36_vm0, %v416_v1  ;;  %v825_v50 = vsel %vm803_vm10, %v814_v45, %v688_v42  ;;  %vm793_vm13 = vcmp.lt.s32.totalorder %v699_v55, 0 }
  0xd7   :  { %1948 = vmatprep.mubr.msk.f32.mxu0 %vm2148_vm1, %v2147_v7 }
  0xd8   :  { %v389_v2 = vpop.permute.xlu1 %388 }
  0xd9   :  { %v191_v3 = vpop.permute.xlu0 %190  ;;  %407 = vst.msk [vmem:[#allocation2 + $0x38] sm:$0xff] %vm400_vm11, %v389_v2  ;;  %vm836_vm11 = vcmp.lt.s32.totalorder %v825_v50, 17  ;;  %v709_v2 = vmul.u32 40, %v708_v60  ;;  %v1135_v60 = vld [vmem:[%s2983_s4 + $0x8] sm:$0xff] }
  0xda   :  { %209 = vst.msk [vmem:[#allocation2 + $0x40] sm:$0x1] %vm208_vm14, %v191_v3  ;;  %vm804_vm14 = vmand %vm793_vm13, %vm782_vm12 }
  0xdb   :  { %v826_v0 = vsel %vm804_vm14, %v815_v59, %v699_v55  ;;  %v1134_v59 = vld [vmem:[%s2983_s4] sm:$0xff] }
  0xdc   :  { %v291_v5 = vpop.permute.xlu1 %290 }
  0xdd   :  { %v241_v4 = vpop.permute.xlu0 %240 }
  0xde   :  { %259 = vst.msk [vmem:[#allocation2 + $0x40] sm:$0x1] %vm258_vm15, %v241_v4  ;;  %vm837_vm15 = vcmp.lt.s32.totalorder %v826_v0, 17 }
  0xdf   :  { %309 = vst.msk [vmem:[#allocation2 + $0x40] sm:$0x1] %vm308_vm2, %v291_v5 }
  0xe0   :  { %v391_v8 = vpop.permute.xlu1 %390  ;;  %v417_v9 = vld [vmem:[#allocation2 + $0x38] sm:$0xff] }
  0xe1   :  { %v341_v6 = vpop.permute.xlu0 %340  ;;  %1949 = vmatmul.mubr.msk.f32.gmra.mrb[14].mxu0 %vm36_vm0, %v417_v9 }
  0xe2   :  { %359 = vst.msk [vmem:[#allocation2 + $0x40] sm:$0x1] %vm358_vm3, %v341_v6  ;;  %1951 = vmatprep.mubr.msk.f32.mxu0 %vm2148_vm1, %v2147_v7 }
  0xe3   :  { %409 = vst.msk [vmem:[#allocation2 + $0x40] sm:$0x1] %vm408_vm4, %v391_v8  ;;  %v2635_v6 = vmul.u32.u64.low 3435973837, %v2630_v61  ;;  %v2636_v8 = vmul.u32.u64.high 3435973837, %v2630_v61, %v2635_v6 }
  0xea   :  { %v418_v10 = vld [vmem:[#allocation2 + $0x40] sm:$0xff] }
  0xeb   :  { %1952 = vmatmul.mubr.msk.f32.gmra.mrb[16].mxu0 %vm36_vm0, %v418_v10 }
  0xec   :  { %1954 = vmatprep.mubr.msk.f32.mxu0 %vm2148_vm1, %v2147_v7 }
  0xef   :  { %1955 = vmatmul.mubr.msk.f32.gmra.mrb[18].mxu0 %vm36_vm0, %v419_v11 }
  0xf0   :  { %1957 = vmatprep.mubr.msk.f32.mxu0 %vm2148_vm1, %v2147_v7  ;;  %vm791_vm1 = vcmp.lt.s32.totalorder %v677_v23, 0 }
  0xf2   :  { %v524_v13 = vpop.f32.mrb[0].mxu0 }
  0xf3   :  { %1958 = vmatmul.mubr.msk.f32.gmra.mrb[20].mxu0 %vm36_vm0, %v420_v12  ;;  %v1929_v14 = vpop.f32.mrb[1].mxu0  ;;  %vm780_vm0 = vcmp.ne.s32.totalorder %v677_v23, 0  ;;  %v710_v12 = vsub.s32 %v2618_v46, %v709_v2  ;;  %v719_v13 = vshrl.u32 %v2636_v8, 5 }
  0xf4   :  { %vm802_vm6 = vmand %vm791_vm1, %vm780_vm0  ;;  %v632_v14 = vadd.s32 48, %v2579_v16 }
  0xf5   :  { %v824_v34 = vsel %vm802_vm6, %v813_v27, %v677_v23  ;;  %vm783_vm2 = vcmp.ne.s32.totalorder %v710_v12, 0  ;;  %vm794_vm3 = vcmp.lt.s32.totalorder %v710_v12, 0  ;;  %v816_v19 = vadd.s32 40, %v710_v12 }
  0xf6   :  { %vm835_vm7 = vcmp.lt.s32.totalorder %v824_v34, 17  ;;  %vm805_vm4 = vmand %vm794_vm3, %vm783_vm2  ;;  %v720_v21 = vmul.u32 40, %v719_v13  ;;  %v1855_v23 = vadd.s32 4294967288, %v632_v14  ;;  %v636_v13 = vadd.s32 80, %v2579_v16  ;;  %v1138_v14 = vld [vmem:[%s2983_s4 + $0x20] sm:$0xff] }
  0xf7   :  { %v827_v27 = vsel %vm805_vm4, %v816_v19, %v710_v12 }
  0xf8   :  { %v721_v34 = vsub.s32 %v2630_v61, %v720_v21  ;;  %vm838_vm0 = vcmp.lt.s32.totalorder %v827_v27, 17  ;;  %v1140_v27 = vld [vmem:[%s2983_s4 + $0x30] sm:$0xff] }
  0xfa   :  { %vm784_vm1 = vcmp.ne.s32.totalorder %v721_v34, 0  ;;  %vm795_vm6 = vcmp.lt.s32.totalorder %v721_v34, 0  ;;  %v817_v42 = vadd.s32 40, %v721_v34 }
 0x160   :  { %v529_v31 = vpop.f32.mrb[2].mxu0 }
 0x161   :  { %v586_v33 = vmul.f32 %v2598_v28, %v529_v31  ;;  %v1932_v35 = vpop.f32.mrb[3].mxu0 }
 0x163   :  { %v604_v36 = vadd.f32 %v2606_v32, %v586_v33 }
 0x165   :  { %v615_v40 = vmax.f32 %v604_v36, 0.0  ;;  %v2650_v35 = vmul.u32.u64.low 3435973837, %v1855_v23  ;;  %v2651_v36 = vmul.u32.u64.high 3435973837, %v1855_v23, %v2650_v35 }
 0x167   :  { %v879_v41 = vsel %vm835_vm7, %v615_v40, 0.0  ;;  %v633_v40 = vadd.s32 56, %v2579_v16  ;;  %vm806_vm7 = vmand %vm795_vm6, %vm784_vm1  ;;  %v730_v44 = vshrl.u32 %v2651_v36, 5 }
 0x168   :  { %891 = vst.msk [vmem:[#allocation3 + $0x8] sm:$0xff] %vm889_vm5, %v879_v41 }
 0x169   :  { %v2656_v43 = vadd.s32 4294967288, %v633_v40 }
 0x171   :  { %v534_v48 = vpop.f32.mrb[4].mxu0 }
 0x172   :  { %v587_v49 = vmul.f32 %v2598_v28, %v534_v48  ;;  %v1935_v51 = vpop.f32.mrb[5].mxu0  ;;  %v828_v48 = vsel %vm806_vm7, %v817_v42, %v721_v34  ;;  %v2716_v34 = vadd.s32 4294967288, %v636_v13 }
 0x173   :  { %v2661_v50 = vmul.u32.u64.low 3435973837, %v2656_v43  ;;  %v2662_v51 = vmul.u32.u64.high 3435973837, %v2656_v43, %v2661_v50  ;;  %vm839_vm8 = vcmp.lt.s32.totalorder %v828_v48, 17 }
 0x174   :  { %v605_v54 = vadd.f32 %v2606_v32, %v587_v49 }
 0x176   :  { %v616_v56 = vmax.f32 %v605_v54, 0.0 }
 0x178   :  { %v880_v57 = vsel %vm836_vm11, %v616_v56, 0.0  ;;  %v731_v56 = vmul.u32 40, %v730_v44  ;;  %vm932_vm11 = vcmask 523264  }
 0x179   :  { %892 = vst.msk [vmem:[#allocation3 + $0x10] sm:$0xff] %vm889_vm5, %v880_v57  ;;  %v634_v57 = vadd.s32 64, %v2579_v16 }
 0x17a   :  { %933 = vst.msk [vmem:[#allocation5] sm:$0xff] %vm932_vm11, %v2147_v7  ;;  %934 = vst.msk [vmem:[#allocation5 + $0x26] sm:$0xff] %vm932_vm11, %v2147_v7  ;;  %v1141_v7 = vld [vmem:[%s2983_s4 + $0x38] sm:$0xff] }
 0x17b   :  { %v2673_v2 = vadd.s32 4294967288, %v634_v57 }
 0x17c   :  { %v539_v62 = vpop.f32.mrb[6].mxu0 }
 0x17d   :  { %v588_v63 = vmul.f32 %v2598_v28, %v539_v62  ;;  %v1938_v1 = vpop.f32.mrb[7].mxu0 }
 0x17e   :  { %v732_v1 = vsub.s32 %v1855_v23, %v731_v56 }
 0x17f   :  { %v606_v3 = vadd.f32 %v2606_v32, %v588_v63  ;;  %v2029_v63 = vpack.c.bf16 %v1135_v60, %v1134_v59 }
 0x180   :  { %v902_v4 = vld [vmem:[#allocation3 + $0x7] ss:$2 sm:$0xff]  ;;  %v912_v5 = vld [vmem:[#allocation3 + $0x8] ss:$2 sm:$0xff]  ;;  %vm785_vm9 = vcmp.ne.s32.totalorder %v732_v1, 0  ;;  %vm796_vm10 = vcmp.lt.s32.totalorder %v732_v1, 0 }
 0x181   :  { %v921_v9 = vmax.f32 %v902_v4, %v912_v5  ;;  %v617_v10 = vmax.f32 %v606_v3, 0.0  ;;  %2030 = vmatprep.subr.bf16.mxu1 %v2029_v63  ;;  %v635_v3 = vadd.s32 72, %v2579_v16  ;;  %v1136_v4 = vld [vmem:[%s2983_s4 + $0x10] sm:$0xff]  ;;  %v1137_v5 = vld [vmem:[%s2983_s4 + $0x18] sm:$0xff]  ;;  %vm2701_vm12 = vmand %vm796_vm10, %vm785_vm9 }
 0x182   :  { %2032 = vmatpush3.bf16.msra.mxu1 %v2029_v63  ;;  %v2033_v6 = vpack.c.bf16 %v1137_v5, %v1136_v4 }
 0x183   :  { %927 = vst.msk [vmem:[#allocation4 + $0x8] sm:$0xff] %vm889_vm5, %v921_v9  ;;  %v881_v11 = vsel %vm837_vm15, %v617_v10, 0.0  ;;  %v741_v9 = vshrl.u32 %v2662_v51, 5  ;;  %v2688_v12 = vadd.s32 4294967288, %v635_v3 }
 0x184   :  { %893 = vst.msk [vmem:[#allocation3 + $0x18] sm:$0xff] %vm889_vm5, %v881_v11  ;;  %v2685_v10 = vmul.u32.u64.low 3435973837, %v2673_v2  ;;  %v2686_v11 = vmul.u32.u64.high 3435973837, %v2673_v2, %v2685_v10  ;;  %2034 = vmatprep.subr.bf16.mxu1 %v2033_v6 }
 0x186   :  { %2036 = vmatpush3.bf16.msra.mxu1 %v2033_v6 }
 0x18a   :  { %v972_v15 = vld [vmem:[#allocation4 + $0x6] sm:$0xff] }
 0x18b   :  { %v946_v17 = vld [vmem:[#allocation4 + $0x5] sm:$0xff]  ;;  %980 = vrot.lane.b32.xlu1 %v972_v15, %s2144_s23  ;;  %v1139_v15 = vld [vmem:[%s2983_s4 + $0x28] sm:$0xff]  ;;  %s2155_s4 = smov 56  }
 0x18c   :  { %954 = vrot.lane.b32.xlu0 %v946_v17, %s2145_s24  ;;  %v937_v20 = vld [vmem:[#allocation4 + $0x4] sm:$0xff]  ;;  %v2037_v21 = vpack.c.bf16 %v1139_v15, %v1138_v14 }
 0x18d   :  { %941 = vst.msk [vmem:[#allocation5 + $0x8] sm:$0xff] %vm889_vm5, %v937_v20  ;;  %v544_v24 = vpop.f32.mrb[8].mxu0  ;;  %v998_v31 = vld [vmem:[#allocation4 + $0x7] sm:$0xff]  ;;  %v818_v20 = vadd.s32 40, %v732_v1 }
 0x18e   :  { %v589_v26 = vmul.f32 %v2598_v28, %v544_v24  ;;  %v1941_v29 = vpop.f32.mrb[9].mxu0  ;;  %v1024_v38 = vld [vmem:[#allocation4 + $0x8] sm:$0xff]  ;;  %v742_v24 = vmul.u32 40, %v741_v9  ;;  %2038 = vmatprep.subr.bf16.mxu1 %v2037_v21 }
 0x18f   :  { %2040 = vmatpush3.bf16.msra.mxu1 %v2037_v21  ;;  %v829_v36 = vsel %vm2701_vm12, %v818_v20, %v732_v1 }
 0x190   :  { %1006 = vrot.lane.b32.xlu0 %v998_v31, %s2150_s14  ;;  %v607_v33 = vadd.f32 %v2606_v32, %v589_v26  ;;  %v743_v42 = vsub.s32 %v2656_v43, %v742_v24  ;;  %vm840_vm13 = vcmp.lt.s32.totalorder %v829_v36, 17 }
 0x192   :  { %v618_v37 = vmax.f32 %v607_v33, 0.0  ;;  %v2713_v31 = vmul.u32.u64.low 3435973837, %v2688_v12  ;;  %v2714_v33 = vmul.u32.u64.high 3435973837, %v2688_v12, %v2713_v31  ;;  %vm786_vm14 = vcmp.ne.s32.totalorder %v743_v42, 0 }
 0x193   :  { %vm797_vm15 = vcmp.lt.s32.totalorder %v743_v42, 0 }
 0x194   :  { %1032 = vrot.lane.b32.xlu0 %v1024_v38, %s2152_s2  ;;  %v882_v41 = vsel %vm838_vm0, %v618_v37, 0.0  ;;  %v763_v56 = vshrl.u32 %v2714_v33, 5  ;;  %vm808_vm2 = vmand %vm797_vm15, %vm786_vm14 }
 0x195   :  { %894 = vst.msk [vmem:[#allocation3 + $0x20] sm:$0xff] %vm889_vm5, %v882_v41  ;;  %v2041_v41 = vpack.c.bf16 %v1141_v7, %v1140_v27 }
 0x197   :  { %2042 = vmatprep.subr.bf16.mxu1 %v2041_v41 }
 0x198   :  { %v549_v45 = vpop.f32.mrb[10].mxu0  ;;  %2044 = vmatpush3.bf16.msra.mxu1 %v2041_v41 }
 0x199   :  { %v590_v47 = vmul.f32 %v2598_v28, %v549_v45  ;;  %v1944_v49 = vpop.f32.mrb[11].mxu0  ;;  %v752_v45 = vshrl.u32 %v2686_v11, 5 }
 0x19b   :  { %v608_v52 = vadd.f32 %v2606_v32, %v590_v47  ;;  %v2731_v47 = vmul.u32.u64.low 3435973837, %v2716_v34  ;;  %v2732_v48 = vmul.u32.u64.high 3435973837, %v2716_v34, %v2731_v47 }
 0x19c   :  { %v904_v54 = vld [vmem:[#allocation3 + $0x17] ss:$2 sm:$0xff]  ;;  %v914_v55 = vld [vmem:[#allocation3 + $0x18] ss:$2 sm:$0xff] }
 0x19d   :  { %v922_v58 = vmax.f32 %v904_v54, %v914_v55  ;;  %v619_v62 = vmax.f32 %v608_v52, 0.0  ;;  %v1128_v52 = vld [vmem:[#allocation5] sm:$0xff]  ;;  %v753_v54 = vmul.u32 40, %v752_v45  ;;  %v819_v55 = vadd.s32 40, %v743_v42 }
 0x19e   :  { %1976 = vmatprep.mubr.msk.f32.mxu1 %vm932_vm11, %v1128_v52  ;;  %v774_v63 = vshrl.u32 %v2732_v48, 5 }
 0x19f   :  { %928 = vst.msk [vmem:[#allocation4 + $0x10] sm:$0xff] %vm889_vm5, %v922_v58  ;;  %v883_v0 = vsel %vm839_vm8, %v619_v62, 0.0  ;;  %v754_v58 = vsub.s32 %v2673_v2, %v753_v54  ;;  %v830_v60 = vsel %vm808_vm2, %v819_v55, %v743_v42  ;;  %v764_v62 = vmul.u32 40, %v763_v56 }
 0x1a0   :  { %895 = vst.msk [vmem:[#allocation3 + $0x28] sm:$0xff] %vm889_vm5, %v883_v0  ;;  %vm841_vm3 = vcmp.lt.s32.totalorder %v830_v60, 17  ;;  %v775_v10 = vmul.u32 40, %v774_v63  ;;  %vm944_vm2 = vcmask 62464  }
 0x1a1   :  { %vm787_vm4 = vcmp.ne.s32.totalorder %v754_v58, 0  ;;  %vm798_vm0 = vcmp.lt.s32.totalorder %v754_v58, 0  ;;  %v765_v9 = vsub.s32 %v2688_v12, %v764_v62  ;;  %v820_v11 = vadd.s32 40, %v754_v58 }
 0x1a2   :  { %vm809_vm1 = vmand %vm798_vm0, %vm787_vm4  ;;  %v776_v14 = vsub.s32 %v2716_v34, %v775_v10  ;;  %vm992_vm4 = vcmask 195712   ;;  %vm1018_vm0 = vcmask 261312  }
 0x1a3   :  { %vm788_vm6 = vcmp.ne.s32.totalorder %v765_v9, 0  ;;  %vm799_vm7 = vcmp.lt.s32.totalorder %v765_v9, 0  ;;  %v821_v21 = vadd.s32 40, %v765_v9 }
 0x1a4   :  { %vm2749_vm8 = vmand %vm799_vm7, %vm788_vm6  ;;  %vm789_vm9 = vcmp.ne.s32.totalorder %v776_v14, 0  ;;  %vm800_vm10 = vcmp.lt.s32.totalorder %v776_v14, 0  ;;  %v822_v7 = vadd.s32 40, %v776_v14  ;;  %vm1070_vm6 = vcmask 392512  }
 0x1a5   :  { %v832_v33 = vsel %vm2749_vm8, %v821_v21, %v765_v9  ;;  %vm1096_vm7 = vcmask 458112   ;;  %vm1122_vm8 = vcmask 523712  }
 0x1a6   :  { %v973_v17 = vld [vmem:[#allocation4 + $0xe] sm:$0xff]  ;;  %vm843_vm14 = vcmp.lt.s32.totalorder %v832_v33, 17 }
 0x1a7   :  { %v947_v19 = vld [vmem:[#allocation4 + $0xd] sm:$0xff]  ;;  %982 = vrot.lane.b32.xlu0 %v973_v17, %s2144_s23 }
 0x1a8   :  { %956 = vrot.lane.b32.xlu1 %v947_v19, %s2145_s24  ;;  %v938_v26 = vld [vmem:[#allocation4 + $0xc] sm:$0xff]  ;;  %v831_v19 = vsel %vm809_vm1, %v820_v11, %v754_v58  ;;  %vm1044_vm1 = vcmask 326912  }
 0x1a9   :  { %v554_v29 = vpop.f32.mrb[12].mxu0  ;;  %942 = vst.msk [vmem:[#allocation5 + $0x10] sm:$0xff] %vm889_vm5, %v938_v26  ;;  %v1076_v38 = vld [vmem:[#allocation4 + $0xa] sm:$0xff]  ;;  %vm842_vm12 = vcmp.lt.s32.totalorder %v831_v19, 17 }
 0x1aa   :  { %v591_v35 = vmul.f32 %v2598_v28, %v554_v29  ;;  %v1947_v37 = vpop.f32.mrb[13].mxu0  ;;  %v1050_v40 = vld [vmem:[#allocation4 + $0x9] sm:$0xff] }
 0x1ab   :  { %1084 = vrot.lane.b32.xlu0 %v1076_v38, %s2153_s0  ;;  %v1025_v50 = vld [vmem:[#allocation4 + $0x10] sm:$0xff] }
 0x1ac   :  { %1058 = vrot.lane.b32.xlu1 %v1050_v40, %s2154_s29  ;;  %v609_v44 = vadd.f32 %v2606_v32, %v591_v35  ;;  %v999_v51 = vld [vmem:[#allocation4 + $0xf] sm:$0xff] }
 0x1ad   :  { %v1102_v57 = vld [vmem:[#allocation4 + $0xb] sm:$0xff] }
 0x1ae   :  { %v620_v49 = vmax.f32 %v609_v44, 0.0 }
 0x1af   :  { %1034 = vrot.lane.b32.xlu0 %v1025_v50, %s2152_s2 }
 0x1b0   :  { %1008 = vrot.lane.b32.xlu1 %v999_v51, %s2150_s14  ;;  %v884_v43 = vsel %vm840_vm13, %v620_v49, 0.0  ;;  %vm2759_vm13 = vmand %vm800_vm10, %vm789_vm9  ;;  %vm970_vm9 = vcmask 128064   ;;  %vm996_vm10 = vcmask 193664  }
 0x1b1   :  { %896 = vst.msk [vmem:[#allocation3 + $0x30] sm:$0xff] %vm889_vm5, %v884_v43  ;;  %v833_v47 = vsel %vm2759_vm13, %v822_v7, %v776_v14  ;;  %vm1048_vm13 = vcmask 324864  }
 0x1b2   :  { %vm844_vm15 = vcmp.lt.s32.totalorder %v833_v47, 17 }
 0x1b4   :  { %1110 = vrot.lane.b32.xlu1 %v1102_v57, %s2155_s4  ;;  %v559_v59 = vpop.f32.mrb[14].mxu0 }
 0x1b5   :  { %v592_v0 = vmul.f32 %v2598_v28, %v559_v59  ;;  %v1950_v1 = vpop.f32.mrb[15].mxu0 }
 0x1b7   :  { %v610_v3 = vadd.f32 %v2606_v32, %v592_v0 }
 0x1b8   :  { %v906_v4 = vld [vmem:[#allocation3 + $0x27] ss:$2 sm:$0xff]  ;;  %v916_v5 = vld [vmem:[#allocation3 + $0x28] ss:$2 sm:$0xff] }
 0x1b9   :  { %v923_v6 = vmax.f32 %v906_v4, %v916_v5  ;;  %v621_v2 = vmax.f32 %v610_v3, 0.0  ;;  %v2785_v5 = vld [vmem:[#allocation8] sm:$0xff] }
 0x1bb   :  { %929 = vst.msk [vmem:[#allocation4 + $0x18] sm:$0xff] %vm889_vm5, %v923_v6  ;;  %v885_v13 = vsel %vm841_vm3, %v621_v2, 0.0  ;;  %vm935_vm3 = vcmask 517120  }
 0x1bc   :  { %897 = vst.msk [vmem:[#allocation3 + $0x38] sm:$0xff] %vm889_vm5, %v885_v13 }
 0x1bd   :  { %936 = vst.msk [vmem:[#allocation5 + $0x2e] sm:$0x3] %vm935_vm3, %v2785_v5  ;;  %vm1413_vm3 = vcmask 130048  }
 0x1be   :  { %v564_v15 = vpop.f32.mrb[16].mxu0  ;;  %1414 = vst.msk [vmem:[#allocation6] sm:$0xff] %vm1413_vm3, %v2785_v5  ;;  %1435 = vst.msk [vmem:[#allocation7] sm:$0xff] %vm1413_vm3, %v2785_v5 }
 0x1bf   :  { %v593_v17 = vmul.f32 %v2598_v28, %v564_v15  ;;  %v1953_v20 = vpop.f32.mrb[17].mxu0  ;;  %1804 = vst.msk [vmem:[#allocation9] sm:$0xff] %vm1413_vm3, %v2785_v5 }
 0x1c1   :  { %v611_v23 = vadd.f32 %v2606_v32, %v593_v17 }
 0x1c2   :  { %v974_v24 = vld [vmem:[#allocation4 + $0x16] sm:$0xff]  ;;  %v569_v27 = vpop.f32.mrb[18].mxu0 }
 0x1c3   :  { %v948_v26 = vld [vmem:[#allocation4 + $0x15] sm:$0xff]  ;;  %v622_v29 = vmax.f32 %v611_v23, 0.0  ;;  %984 = vrot.lane.b32.xlu0 %v974_v24, %s2144_s23  ;;  %v594_v31 = vmul.f32 %v2598_v28, %v569_v27  ;;  %v1956_v34 = vpop.f32.mrb[19].mxu0 }
 0x1c4   :  { %958 = vrot.lane.b32.xlu1 %v948_v26, %s2145_s24  ;;  %v939_v36 = vld [vmem:[#allocation4 + $0x14] sm:$0xff] }
 0x1c5   :  { %v886_v37 = vsel %vm842_vm12, %v622_v29, 0.0  ;;  %v612_v38 = vadd.f32 %v2606_v32, %v594_v31  ;;  %943 = vst.msk [vmem:[#allocation5 + $0x18] sm:$0xff] %vm889_vm5, %v939_v36  ;;  %v1051_v41 = vld [vmem:[#allocation4 + $0x11] sm:$0xff]  ;;  %vm1022_vm12 = vcmask 259264  }
 0x1c6   :  { %898 = vst.msk [vmem:[#allocation3 + $0x40] sm:$0xff] %vm889_vm5, %v886_v37  ;;  %v574_v40 = vpop.f32.mrb[20].mxu0  ;;  %v1000_v42 = vld [vmem:[#allocation4 + $0x17] sm:$0xff] }
 0x1c7   :  { %v623_v44 = vmax.f32 %v612_v38, 0.0  ;;  %v595_v45 = vmul.f32 %v2598_v28, %v574_v40  ;;  %1060 = vrot.lane.b32.xlu0 %v1051_v41, %s2154_s29  ;;  %v1959_v48 = vpop.f32.mrb[21].mxu0  ;;  %v1103_v51 = vld [vmem:[#allocation4 + $0x13] sm:$0xff] }
 0x1c8   :  { %1010 = vrot.lane.b32.xlu1 %v1000_v42, %s2150_s14  ;;  %v1026_v52 = vld [vmem:[#allocation4 + $0x18] sm:$0xff] }
 0x1c9   :  { %v887_v49 = vsel %vm843_vm14, %v623_v44, 0.0  ;;  %v613_v50 = vadd.f32 %v2606_v32, %v595_v45  ;;  %v1077_v56 = vld [vmem:[#allocation4 + $0x12] sm:$0xff]  ;;  %vm1074_vm14 = vcmask 390464  }
 0x1ca   :  { %899 = vst.msk [vmem:[#allocation3 + $0x48] sm:$0xff] %vm889_vm5, %v887_v49 }
 0x1cb   :  { %v624_v43 = vmax.f32 %v613_v50, 0.0  ;;  %1112 = vrot.lane.b32.xlu0 %v1103_v51, %s2155_s4  ;;  %v1133_v51 = vld [vmem:[#allocation5 + $0x28] sm:$0xff] }
 0x1cc   :  { %1036 = vrot.lane.b32.xlu1 %v1026_v52, %s2152_s2 }
 0x1cd   :  { %v888_v28 = vsel %vm844_vm15, %v624_v43, 0.0  ;;  %v908_v54 = vld [vmem:[#allocation3 + $0x37] ss:$2 sm:$0xff]  ;;  %v918_v55 = vld [vmem:[#allocation3 + $0x38] ss:$2 sm:$0xff]  ;;  %vm1100_vm15 = vcmask 456064  }
 0x1ce   :  { %900 = vst.msk [vmem:[#allocation3 + $0x50] sm:$0xff] %vm889_vm5, %v888_v28  ;;  %v924_v57 = vmax.f32 %v908_v54, %v918_v55  ;;  %v1304_v43 = vshrl.u32 %v2583_v18, 4 }
 0x1d0   :  { %1086 = vrot.lane.b32.xlu1 %v1077_v56, %s2153_s0  ;;  %930 = vst.msk [vmem:[#allocation4 + $0x20] sm:$0xff] %vm889_vm5, %v924_v57  ;;  %v1305_v28 = vmul.u32 20, %v1304_v43  ;;  %v1866_v56 = vld [vmem:[%s2984_s5] ss:$0 sm:$0xff]  ;;  %v1594_v43 = vld [vmem:[%s2986_s7 + $0x8] sm:$0xff] }
 0x1d2   :  { %v1306_v54 = vsub.s32 %v2579_v16, %v1305_v28 }
 0x1d4   :  { %v1372_v55 = vadd.s32 20, %v1306_v54 }
 0x1d5   :  { %v910_v32 = vld [vmem:[#allocation3 + $0x47] ss:$2 sm:$0xff]  ;;  %v920_v58 = vld [vmem:[#allocation3 + $0x48] ss:$2 sm:$0xff] }
 0x1d6   :  { %v925_v59 = vmax.f32 %v910_v32, %v920_v58  ;;  %v1867_v32 = vld [vmem:[%s2985_s6] ss:$0 sm:$0xff] }
 0x1d7   :  { %v975_v60 = vld [vmem:[#allocation4 + $0x1e] sm:$0x3f] }
 0x1d8   :  { %v949_v62 = vld [vmem:[#allocation4 + $0x1d] sm:$0x3f]  ;;  %986 = vrot.lane.b32.xlu1 %v975_v60, %s2144_s23  ;;  %931 = vst.msk [vmem:[#allocation4 + $0x28] sm:$0xff] %vm889_vm5, %v925_v59  ;;  %vm966_vm5 = vcmask 130112  }
 0x1d9   :  { %960 = vrot.lane.b32.xlu0 %v949_v62, %s2145_s24  ;;  %v940_v63 = vld [vmem:[#allocation4 + $0x1c] sm:$0x3f]  ;;  %v1079_v10 = vld [vmem:[#allocation4 + $0x22] sm:$0x3f] }
 0x1da   :  { %v1078_v0 = vld [vmem:[#allocation4 + $0x1a] sm:$0xff]  ;;  %945 = vst.msk [vmem:[#allocation5 + $0x20] sm:$0x3f] %vm944_vm2, %v940_v63  ;;  %vm1126_vm2 = vcmask 521664  }
 0x1db   :  { %v1052_v1 = vld [vmem:[#allocation4 + $0x19] sm:$0xff]  ;;  %v1053_v6 = vld [vmem:[#allocation4 + $0x21] sm:$0x3f] }
 0x1dc   :  { %1088 = vrot.lane.b32.xlu1 %v1078_v0, %s2153_s0  ;;  %v1027_v3 = vld [vmem:[#allocation4 + $0x20] sm:$0x3f] }
 0x1dd   :  { %1062 = vrot.lane.b32.xlu0 %v1052_v1, %s2154_s29  ;;  %v1001_v4 = vld [vmem:[#allocation4 + $0x1f] sm:$0x3f]  ;;  %v1326_v1 = vshrl.u32 %v2612_v39, 4 }
 0x1de   :  { %v1104_v9 = vld [vmem:[#allocation4 + $0x1b] sm:$0xff] }
 0x1df   :  { %v1105_v2 = vld [vmem:[#allocation4 + $0x23] sm:$0x3f] }
 0x1e0   :  { %1038 = vrot.lane.b32.xlu1 %v1027_v3, %s2152_s2  ;;  %v1315_v3 = vshrl.u32 %v2592_v25, 4 }
 0x1e1   :  { %1012 = vrot.lane.b32.xlu0 %v1001_v4, %s2150_s14  ;;  %v1327_v4 = vmul.u32 20, %v1326_v1 }
 0x1e4   :  { %1064 = vrot.lane.b32.xlu1 %v1053_v6, %s2154_s29  ;;  %v1348_v6 = vshrl.u32 %v2636_v8, 4 }
 0x1e5   :  { %1114 = vrot.lane.b32.xlu0 %v1104_v9, %s2155_s4  ;;  %v1337_v9 = vshrl.u32 %v2623_v53, 4 }
 0x1e8   :  { %1116 = vrot.lane.b32.xlu1 %v1105_v2, %s2155_s4 }
 0x1e9   :  { %1090 = vrot.lane.b32.xlu0 %v1079_v10, %s2153_s0  ;;  %v1328_v10 = vsub.s32 %v2601_v30, %v1327_v4  ;;  %v1598_v4 = vld [vmem:[%s2986_s7 + $0x28] sm:$0xff] }
 0x1fd   :  { %v981_v11 = vpop.permute.xlu1 %980 }
 0x1fe   :  { %v955_v13 = vpop.permute.xlu0 %954 }
 0x1ff   :  { %967 = vst.msk [vmem:[#allocation5 + $0x8] sm:$0xff] %vm966_vm5, %v955_v13  ;;  %v1338_v13 = vmul.u32 20, %v1337_v9 }
 0x200   :  { %993 = vst.msk [vmem:[#allocation5 + $0x8] sm:$0xff] %vm992_vm4, %v981_v11  ;;  %v1349_v11 = vmul.u32 20, %v1348_v6 }
 0x201   :  { %v1339_v53 = vsub.s32 %v2618_v46, %v1338_v13 }
 0x202   :  { %v1007_v14 = vpop.permute.xlu0 %1006 }
 0x203   :  { %1019 = vst.msk [vmem:[#allocation5 + $0x8] sm:$0xff] %vm1018_vm0, %v1007_v14  ;;  %v1374_v14 = vadd.s32 20, %v1328_v10 }
 0x206   :  { %v1033_v15 = vpop.permute.xlu0 %1032 }
 0x207   :  { %1045 = vst.msk [vmem:[#allocation5 + $0x8] sm:$0xff] %vm1044_vm1, %v1033_v15  ;;  %v1350_v15 = vsub.s32 %v2630_v61, %v1349_v11  ;;  %v1600_v11 = vld [vmem:[%s2986_s7 + $0x38] sm:$0xff] }
 0x209   :  { %v1376_v46 = vadd.s32 20, %v1350_v15 }
 0x219   :  { %v983_v17 = vpop.permute.xlu0 %982 }
 0x21a   :  { %v957_v19 = vpop.permute.xlu1 %956 }
 0x21b   :  { %968 = vst.msk [vmem:[#allocation5 + $0x10] sm:$0xff] %vm966_vm5, %v957_v19 }
 0x21c   :  { %994 = vst.msk [vmem:[#allocation5 + $0x10] sm:$0xff] %vm992_vm4, %v983_v17 }
 0x21d   :  { %v1085_v20 = vpop.permute.xlu0 %1084 }
 0x21e   :  { %v1059_v21 = vpop.permute.xlu1 %1058 }
 0x21f   :  { %1071 = vst.msk [vmem:[#allocation5 + $0x8] sm:$0xff] %vm1070_vm6, %v1059_v21 }
 0x220   :  { %1097 = vst.msk [vmem:[#allocation5 + $0x8] sm:$0xff] %vm1096_vm7, %v1085_v20 }
 0x221   :  { %v1035_v12 = vpop.permute.xlu0 %1034 }
 0x222   :  { %v1009_v23 = vpop.permute.xlu1 %1008 }
 0x223   :  { %1020 = vst.msk [vmem:[#allocation5 + $0x10] sm:$0xff] %vm1018_vm0, %v1009_v23 }
 0x224   :  { %1046 = vst.msk [vmem:[#allocation5 + $0x10] sm:$0xff] %vm1044_vm1, %v1035_v12 }
 0x226   :  { %v1111_v24 = vpop.permute.xlu1 %1110 }
 0x227   :  { %1123 = vst.msk [vmem:[#allocation5 + $0x8] sm:$0xff] %vm1122_vm8, %v1111_v24 }
 0x22e   :  { %v1129_v26 = vld [vmem:[#allocation5 + $0x8] sm:$0xff] }
 0x22f   :  { %1977 = vmatmul.mubr.msk.f32.vlgmr.msra.gmra.mrb[0].mxu1 %vm932_vm11, %v1129_v26 }
 0x235   :  { %v985_v27 = vpop.permute.xlu0 %984 }
 0x236   :  { %v959_v29 = vpop.permute.xlu1 %958 }
 0x237   :  { %969 = vst.msk [vmem:[#allocation5 + $0x18] sm:$0xff] %vm966_vm5, %v959_v29  ;;  %vm1354_vm5 = vcmp.ne.s32.totalorder %v1306_v54, 0  ;;  %v1606_v29 = vld [vmem:[%s2986_s7 + $0x68] sm:$0xff] }
 0x238   :  { %995 = vst.msk [vmem:[#allocation5 + $0x18] sm:$0xff] %vm992_vm4, %v985_v27  ;;  %vm1360_vm4 = vcmp.lt.s32.totalorder %v1306_v54, 0 }
 0x239   :  { %v1061_v31 = vpop.permute.xlu0 %1060 }
 0x23a   :  { %v1011_v33 = vpop.permute.xlu1 %1010  ;;  %1072 = vst.msk [vmem:[#allocation5 + $0x10] sm:$0xff] %vm1070_vm6, %v1061_v31  ;;  %v1375_v31 = vadd.s32 20, %v1339_v53 }
 0x23b   :  { %1021 = vst.msk [vmem:[#allocation5 + $0x18] sm:$0xff] %vm1018_vm0, %v1011_v33 }
 0x23d   :  { %v1113_v35 = vpop.permute.xlu0 %1112 }
 0x23e   :  { %v1037_v34 = vpop.permute.xlu1 %1036 }
 0x23f   :  { %1047 = vst.msk [vmem:[#allocation5 + $0x18] sm:$0xff] %vm1044_vm1, %v1037_v34  ;;  %vm1356_vm1 = vcmp.ne.s32.totalorder %v1328_v10, 0 }
 0x242   :  { %v1087_v7 = vpop.permute.xlu1 %1086 }
 0x243   :  { %1098 = vst.msk [vmem:[#allocation5 + $0x10] sm:$0xff] %vm1096_vm7, %v1087_v7 }
 0x244   :  { %1124 = vst.msk [vmem:[#allocation5 + $0x10] sm:$0xff] %vm1122_vm8, %v1113_v35 }
 0x24a   :  { %v987_v36 = vpop.permute.xlu1 %986 }
 0x24b   :  { %v961_v37 = vpop.permute.xlu0 %960  ;;  %v1130_v38 = vld [vmem:[#allocation5 + $0x10] sm:$0xff] }
 0x24c   :  { %971 = vst.msk [vmem:[#allocation5 + $0x20] sm:$0x3f] %vm970_vm9, %v961_v37  ;;  %1979 = vmatprep.mubr.msk.f32.mxu1 %vm932_vm11, %v1130_v38 }
 0x24d   :  { %997 = vst.msk [vmem:[#allocation5 + $0x20] sm:$0x3f] %vm996_vm10, %v987_v36 }
 0x24e   :  { %v1089_v40 = vpop.permute.xlu1 %1088 }
 0x24f   :  { %v1063_v41 = vpop.permute.xlu0 %1062 }
 0x250   :  { %1073 = vst.msk [vmem:[#allocation5 + $0x18] sm:$0xff] %vm1070_vm6, %v1063_v41  ;;  %vm1362_vm6 = vcmp.lt.s32.totalorder %v1328_v10, 0 }
 0x251   :  { %1099 = vst.msk [vmem:[#allocation5 + $0x18] sm:$0xff] %vm1096_vm7, %v1089_v40  ;;  %vm2841_vm9 = vmand %vm1362_vm6, %vm1356_vm1  ;;  %vm1438_vm6 = vcmask 125952  }
 0x252   :  { %v1039_v42 = vpop.permute.xlu1 %1038  ;;  %v1380_v12 = vsel %vm2841_vm9, %v1374_v14, %v1328_v10  ;;  %vm1484_vm9 = vcmask 392448  }
 0x253   :  { %v1013_v44 = vpop.permute.xlu0 %1012 }
 0x254   :  { %1023 = vst.msk [vmem:[#allocation5 + $0x20] sm:$0x3f] %vm1022_vm12, %v1013_v44  ;;  %vm1358_vm12 = vcmp.ne.s32.totalorder %v1350_v15, 0 }
 0x255   :  { %1049 = vst.msk [vmem:[#allocation5 + $0x20] sm:$0x3f] %vm1048_vm13, %v1039_v42  ;;  %vm1364_vm13 = vcmp.lt.s32.totalorder %v1350_v15, 0 }
 0x256   :  { %v1065_v45 = vpop.permute.xlu1 %1064 }
 0x257   :  { %v1115_v47 = vpop.permute.xlu0 %1114  ;;  %1075 = vst.msk [vmem:[#allocation5 + $0x20] sm:$0x3f] %vm1074_vm14, %v1065_v45  ;;  %vm1357_vm14 = vcmp.ne.s32.totalorder %v1339_v53, 0 }
 0x258   :  { %1125 = vst.msk [vmem:[#allocation5 + $0x18] sm:$0xff] %vm1122_vm8, %v1115_v47 }
 0x25a   :  { %v1117_v49 = vpop.permute.xlu1 %1116 }
 0x25b   :  { %v1091_v48 = vpop.permute.xlu0 %1090 }
 0x25c   :  { %1101 = vst.msk [vmem:[#allocation5 + $0x20] sm:$0x3f] %vm1100_vm15, %v1091_v48  ;;  %vm1363_vm15 = vcmp.lt.s32.totalorder %v1339_v53, 0 }
 0x25d   :  { %1127 = vst.msk [vmem:[#allocation5 + $0x20] sm:$0x3f] %vm1126_vm2, %v1117_v49  ;;  %vm1386_vm2 = vcmp.lt.s32.totalorder %v1380_v12, 10  ;;  %v1602_v12 = vld [vmem:[%s2986_s7 + $0x48] sm:$0xff] }
 0x25f   :  { %v1131_v50 = vld [vmem:[#allocation5 + $0x18] sm:$0xff] }
 0x260   :  { %1980 = vmatmul.mubr.msk.f32.gmra.mrb[2].mxu1 %vm932_vm11, %v1131_v50 }
 0x264   :  { %v1132_v52 = vld [vmem:[#allocation5 + $0x20] sm:$0xff] }
 0x265   :  { %1982 = vmatprep.mubr.msk.f32.mxu1 %vm932_vm11, %v1132_v52  ;;  %v1593_v52 = vld [vmem:[%s2986_s7] sm:$0xff] }
 0x266   :  { %1983 = vmatmul.mubr.msk.f32.gmra.mrb[4].mxu1 %vm932_vm11, %v1133_v51  ;;  %vm1366_vm11 = vmand %vm1360_vm4, %vm1354_vm5 }
 0x267   :  { %2017 = vmatprep.mubr.f32.mxu1 %v2785_v5  ;;  %v1378_v59 = vsel %vm1366_vm11, %v1372_v55, %v1306_v54  ;;  %v1316_v5 = vmul.u32 20, %v1315_v3  ;;  %vm2854_vm5 = vmand %vm1364_vm13, %vm1358_vm12  ;;  %v2045_v55 = vpack.c.bf16 %v1594_v43, %v1593_v52  ;;  %v1597_v3 = vld [vmem:[%s2986_s7 + $0x20] sm:$0xff]  ;;  %vm1524_vm12 = vcmask 654848  }
 0x268   :  { %vm1384_vm0 = vcmp.lt.s32.totalorder %v1378_v59, 10  ;;  %vm2858_vm11 = vmand %vm1363_vm15, %vm1357_vm14  ;;  %v1382_v38 = vsel %vm2854_vm5, %v1376_v46, %v1350_v15  ;;  %v2053_v9 = vpack.c.bf16 %v1598_v4, %v1597_v3  ;;  %vm1467_vm13 = vcmask 254080  }
 0x269   :  { %v1317_v2 = vsub.s32 %v2587_v22, %v1316_v5  ;;  %v1381_v44 = vsel %vm2858_vm11, %v1375_v31, %v1339_v53  ;;  %2046 = vmatprep.subr.bf16.mxu1 %v2045_v55  ;;  %vm1544_vm14 = vcmask 786048   ;;  %vm1487_vm15 = vcmask 385280  }
 0x26a   :  { %vm1387_vm1 = vcmp.lt.s32.totalorder %v1381_v44, 10  ;;  %2048 = vmatpush3.bf16.msra.mxu1 %v2045_v55  ;;  %vm1507_vm5 = vcmask 516480   ;;  %vm1527_vm11 = vcmask 647680  }
 0x26b   :  { %vm1355_vm7 = vcmp.ne.s32.totalorder %v1317_v2, 0  ;;  %vm1361_vm8 = vcmp.lt.s32.totalorder %v1317_v2, 0  ;;  %v1373_v8 = vadd.s32 20, %v1317_v2 }
 0x26c   :  { %vm2846_vm10 = vmand %vm1361_vm8, %vm1355_vm7  ;;  %vm1447_vm7 = vcmask 122880   ;;  %vm1464_vm8 = vcmask 261248  }
 0x26d   :  { %v1379_v24 = vsel %vm2846_vm10, %v1373_v8, %v1317_v2  ;;  %v1599_v2 = vld [vmem:[%s2986_s7 + $0x30] sm:$0xff]  ;;  %vm1504_vm10 = vcmask 523648  }
 0x26e   :  { %vm1385_vm4 = vcmp.lt.s32.totalorder %v1379_v24, 10  ;;  %v2057_v14 = vpack.c.bf16 %v1600_v11, %v1599_v2  ;;  %v1604_v24 = vld [vmem:[%s2986_s7 + $0x58] sm:$0xff] }
 0x302   :  { %v1978_v57 = vpop.f32.mrb[0].mxu1 }
 0x303   :  { %v1263_v58 = vmul.f32 %v1978_v57, %v1866_v56  ;;  %v1226_v60 = vpop.f32.mrb[1].mxu1 }
 0x305   :  { %v1276_v62 = vadd.f32 %v1867_v32, %v1263_v58  ;;  %v1596_v58 = vld [vmem:[%s2986_s7 + $0x18] sm:$0xff] }
 0x307   :  { %v1282_v63 = vmax.f32 %v1276_v62, 0.0 }
 0x309   :  { %v1408_v0 = vsel %vm1384_vm0, %v1282_v63, 0.0  ;;  %vm1388_vm0 = vcmp.lt.s32.totalorder %v1382_v38, 10 }
 0x30a   :  { %1415 = vst.msk [vmem:[#allocation6 + $0x8] sm:$0xff] %vm1413_vm3, %v1408_v0 }
 0x333   :  { %v1981_v20 = vpop.f32.mrb[2].mxu1 }
 0x334   :  { %v1265_v21 = vmul.f32 %v1981_v20, %v1866_v56  ;;  %v1236_v23 = vpop.f32.mrb[3].mxu1 }
 0x335   :  { %v1264_v61 = vmul.f32 %v1866_v56, %v1236_v23 }
 0x336   :  { %v1278_v26 = vadd.f32 %v1867_v32, %v1265_v21  ;;  %v1601_v21 = vld [vmem:[%s2986_s7 + $0x40] sm:$0xff] }
 0x337   :  { %v1277_v27 = vadd.f32 %v1867_v32, %v1264_v61  ;;  %v2061_v23 = vpack.c.bf16 %v1602_v12, %v1601_v21  ;;  %v1603_v61 = vld [vmem:[%s2986_s7 + $0x50] sm:$0xff] }
 0x338   :  { %v1284_v33 = vmax.f32 %v1278_v26, 0.0  ;;  %v2065_v26 = vpack.c.bf16 %v1604_v24, %v1603_v61 }
 0x339   :  { %v1283_v7 = vmax.f32 %v1277_v27, 0.0  ;;  %v1984_v35 = vpop.f32.mrb[4].mxu1  ;;  %v1605_v27 = vld [vmem:[%s2986_s7 + $0x60] sm:$0xff] }
 0x33a   :  { %v1410_v36 = vsel %vm1386_vm2, %v1284_v33, 0.0  ;;  %v1267_v37 = vmul.f32 %v1984_v35, %v1866_v56  ;;  %v1246_v40 = vpop.f32.mrb[5].mxu1  ;;  %v2069_v33 = vpack.c.bf16 %v1606_v29, %v1605_v27  ;;  %v1608_v35 = vld [vmem:[%s2986_s7 + $0x78] sm:$0xff]  ;;  %vm1564_vm2 = vcmask 917248  }
 0x33b   :  { %1417 = vst.msk [vmem:[#allocation6 + $0x18] sm:$0xff] %vm1413_vm3, %v1410_v36  ;;  %v1409_v41 = vsel %vm1385_vm4, %v1283_v7, 0.0  ;;  %v1266_v42 = vmul.f32 %v1866_v56, %v1246_v40  ;;  %v1607_v7 = vld [vmem:[%s2986_s7 + $0x70] sm:$0xff]  ;;  %vm1584_vm4 = vcmask 1048448  }
 0x33c   :  { %1416 = vst.msk [vmem:[#allocation6 + $0x10] sm:$0xff] %vm1413_vm3, %v1409_v41  ;;  %v1280_v45 = vadd.f32 %v1867_v32, %v1267_v37  ;;  %v2073_v37 = vpack.c.bf16 %v1608_v35, %v1607_v7 }
 0x33d   :  { %v1279_v47 = vadd.f32 %v1867_v32, %v1266_v42  ;;  %v1595_v32 = vld [vmem:[%s2986_s7 + $0x10] sm:$0xff] }
 0x33e   :  { %v1286_v48 = vmax.f32 %v1280_v45, 0.0  ;;  %v2049_v62 = vpack.c.bf16 %v1596_v58, %v1595_v32 }
 0x33f   :  { %v1285_v49 = vmax.f32 %v1279_v47, 0.0 }
 0x340   :  { %v1412_v50 = vsel %vm1388_vm0, %v1286_v48, 0.0  ;;  %2050 = vmatprep.subr.bf16.mxu1 %v2049_v62  ;;  %vm1547_vm0 = vcmask 778880  }
 0x341   :  { %1419 = vst.msk [vmem:[#allocation6 + $0x28] sm:$0xff] %vm1413_vm3, %v1412_v50  ;;  %v1411_v51 = vsel %vm1387_vm1, %v1285_v49, 0.0  ;;  %2052 = vmatpush3.bf16.msra.mxu1 %v2049_v62  ;;  %vm1567_vm1 = vcmask 910080  }
 0x342   :  { %1418 = vst.msk [vmem:[#allocation6 + $0x20] sm:$0xff] %vm1413_vm3, %v1411_v51  ;;  %2054 = vmatprep.subr.bf16.mxu1 %v2053_v9 }
 0x343   :  { %v1421_v28 = vld [vmem:[#allocation6 + $0x7] ss:$2 sm:$0xff]  ;;  %v1427_v54 = vld [vmem:[#allocation6 + $0x8] ss:$2 sm:$0xff] }
 0x344   :  { %v1432_v56 = vmax.f32 %v1421_v28, %v1427_v54 }
 0x345   :  { %2056 = vmatpush3.bf16.msra.mxu1 %v2053_v9 }
 0x346   :  { %1436 = vst.msk [vmem:[#allocation7 + $0x8] sm:$0xff] %vm1413_vm3, %v1432_v56  ;;  %2058 = vmatprep.subr.bf16.mxu1 %v2057_v14 }
 0x348   :  { %v1431_v57 = vld [vmem:[#allocation6 + $0x28] ss:$2 sm:$0xf] }
 0x349   :  { %v1425_v59 = vld [vmem:[#allocation6 + $0x27] ss:$2 sm:$0xf]  ;;  %v1423_v60 = vld [vmem:[#allocation6 + $0x17] ss:$2 sm:$0xff]  ;;  %2060 = vmatpush3.bf16.msra.mxu1 %v2057_v14 }
 0x34a   :  { %v1429_v63 = vld [vmem:[#allocation6 + $0x18] ss:$2 sm:$0xff]  ;;  %v1434_v0 = vmax.f32 %v1425_v59, %v1431_v57  ;;  %2062 = vmatprep.subr.bf16.mxu1 %v2061_v23 }
 0x34b   :  { %v1433_v1 = vmax.f32 %v1423_v60, %v1429_v63 }
 0x34c   :  { %1439 = vst.msk [vmem:[#allocation7 + $0x18] sm:$0xf] %vm1438_vm6, %v1434_v0 }
 0x34d   :  { %v1449_v5 = vld [vmem:[#allocation7 + $0x5] sm:$0xff]  ;;  %1437 = vst.msk [vmem:[#allocation7 + $0x10] sm:$0xff] %vm1413_vm3, %v1433_v1  ;;  %2064 = vmatpush3.bf16.msra.mxu1 %v2061_v23 }
 0x34e   :  { %v1469_v6 = vld [vmem:[#allocation7 + $0x6] sm:$0xff]  ;;  %1455 = vrot.lane.b32.xlu0 %v1449_v5, %s2144_s23  ;;  %2066 = vmatprep.subr.bf16.mxu1 %v2065_v26 }
 0x34f   :  { %1475 = vrot.lane.b32.xlu1 %v1469_v6, %s2152_s2  ;;  %v1442_v10 = vld [vmem:[#allocation7 + $0x4] sm:$0xff] }
 0x350   :  { %1445 = vst.msk [vmem:[#allocation8 + $0x8] sm:$0xff] %vm1413_vm3, %v1442_v10  ;;  %v1489_v13 = vld [vmem:[#allocation7 + $0x7] sm:$0xff] }
 0x351   :  { %v1509_v17 = vld [vmem:[#allocation7 + $0x8] sm:$0xff]  ;;  %2068 = vmatpush3.bf16.msra.mxu1 %v2065_v26 }
 0x352   :  { %1495 = vrot.lane.b32.xlu0 %v1489_v13, %s2153_s0  ;;  %2070 = vmatprep.subr.bf16.mxu1 %v2069_v33  ;;  %v1737_v13 = vshrl.u32 %v2583_v18, 3  ;;  %v1869_v18 = vld [vmem:[%s2988_s9] ss:$0 sm:$0xff] }
 0x353   :  { %v1511_v42 = vld [vmem:[#allocation7 + $0x18] sm:$0x1]  ;;  %v1531_v45 = vld [vmem:[#allocation7 + $0x19] sm:$0x1]  ;;  %v1551_v48 = vld [vmem:[#allocation7 + $0x1a] sm:$0x1] }
 0x354   :  { %v1450_v15 = vld [vmem:[#allocation7 + $0xd] sm:$0xff]  ;;  %v1451_v8 = vld [vmem:[#allocation7 + $0x15] sm:$0x1]  ;;  %v1471_v31 = vld [vmem:[#allocation7 + $0x16] sm:$0x1]  ;;  %v1738_v14 = vmul.u32 10, %v1737_v13 }
 0x355   :  { %1457 = vrot.lane.b32.xlu1 %v1450_v15, %s2144_s23  ;;  %v1470_v53 = vld [vmem:[#allocation7 + $0xe] sm:$0xff]  ;;  %v1491_v38 = vld [vmem:[#allocation7 + $0x17] sm:$0x1]  ;;  %2072 = vmatpush3.bf16.msra.mxu1 %v2069_v33  ;;  %v1571_v50 = vld [vmem:[#allocation7 + $0x1b] sm:$0x1] }
 0x356   :  { %1515 = vrot.lane.b32.xlu0 %v1509_v17, %s2156_s26  ;;  %v1443_v19 = vld [vmem:[#allocation7 + $0xc] sm:$0xff]  ;;  %v1444_v20 = vld [vmem:[#allocation7 + $0x14] sm:$0x1]  ;;  %2074 = vmatprep.subr.bf16.mxu1 %v2073_v37  ;;  %v1739_v15 = vsub.s32 %v2579_v16, %v1738_v14  ;;  %v1759_v17 = vshrl.u32 %v2612_v39, 3 }
 0x357   :  { %1446 = vst.msk [vmem:[#allocation8 + $0x10] sm:$0xff] %vm1413_vm3, %v1443_v19  ;;  %v1529_v46 = vld [vmem:[#allocation7 + $0x9] sm:$0xff]  ;;  %v1530_v44 = vld [vmem:[#allocation7 + $0x11] sm:$0xff]  ;;  %v1868_v19 = vld [vmem:[%s2987_s8] ss:$0 sm:$0xff]  ;;  %s2160_s8 = smov [#allocation10]  }
 0x358   :  { %1448 = vst.msk [vmem:[#allocation8 + $0x18] sm:$0x1] %vm1447_vm7, %v1444_v20  ;;  %v1490_v34 = vld [vmem:[#allocation7 + $0xf] sm:$0xff]  ;;  %vm1587_vm7 = vcmask 1041280   ;;  %v1760_v21 = vmul.u32 10, %v1759_v17  ;;  %s1826_s9 = sshll.u32 %s2160_s8, 4  ;;  %s1827_s9 = int_to_ptr.vmem [resolvable:$true] %s1826_s9 }
 0x359   :  { %1459 = vrot.lane.b32.xlu1 %v1451_v8, %s2144_s23  ;;  %v1549_v36 = vld [vmem:[#allocation7 + $0xa] sm:$0xff]  ;;  %2076 = vmatpush3.bf16.msra.mxu1 %v2073_v37  ;;  %v1550_v47 = vld [vmem:[#allocation7 + $0x12] sm:$0xff]  ;;  %v1777_v8 = vadd.s32 10, %v1739_v15  ;;  %s2118_s22 = scalar_lea.vmem %s1827_s9, 256  ;;  %p2123_p1 = scmp.lt.s32.totalorder %s1827_s9, %s1827_s9 }
 0x35a   :  { %1477 = vrot.lane.b32.xlu0 %v1470_v53, %s2152_s2  ;;  %v1510_v40 = vld [vmem:[#allocation7 + $0x10] sm:$0xff]  ;;  %v1748_v53 = vshrl.u32 %v2592_v25, 3  ;;  %v1761_v39 = vsub.s32 %v2601_v30, %v1760_v21  ;;  %p2119_p0 = scmp.ne.s32.totalorder %s1827_s9, %s2118_s22  ;;  %p2124_p2 = scmp.lt.s32.totalorder %s2118_s22, %s2118_s22 }
 0x35b   :  { %v1569_v41 = vld [vmem:[#allocation7 + $0xb] sm:$0xff]  ;;  %v1570_v49 = vld [vmem:[#allocation7 + $0x13] sm:$0xff] }
 0x35c   :  { %v1749_v61 = vmul.u32 10, %v1748_v53  ;;  %v1779_v27 = vadd.s32 10, %v1761_v39  ;;  %p2125_p3 = por %p2124_p2, %p2123_p1 }
 0x35d   :  { %1535 = vrot.lane.b32.xlu1 %v1529_v46, %s2157_s12 }
 0x35e   :  { %1479 = vrot.lane.b32.xlu0 %v1471_v31, %s2152_s2  ;;  %s2159_s2 = smov 112   ;;  %v1750_v26 = vsub.s32 %v2587_v22, %v1749_v61  ;;  %p2126_p4 = pnand %p2125_p3, %p2119_p0 }
 0x360   :  { %v1778_v29 = vadd.s32 10, %v1750_v26 }
 0x361   :  { %1497 = vrot.lane.b32.xlu1 %v1490_v34, %s2153_s0 }
 0x362   :  { %1555 = vrot.lane.b32.xlu0 %v1549_v36, %s2158_s1 }
 0x365   :  { %1499 = vrot.lane.b32.xlu1 %v1491_v38, %s2153_s0 }
 0x366   :  { %1517 = vrot.lane.b32.xlu0 %v1510_v40, %s2156_s26 }
 0x369   :  { %1575 = vrot.lane.b32.xlu1 %v1569_v41, %s2159_s2 }
 0x36a   :  { %1519 = vrot.lane.b32.xlu0 %v1511_v42, %s2156_s26 }
 0x36d   :  { %1537 = vrot.lane.b32.xlu1 %v1530_v44, %s2157_s12 }
 0x36e   :  { %1539 = vrot.lane.b32.xlu0 %v1531_v45, %s2157_s12 }
 0x371   :  { %1557 = vrot.lane.b32.xlu1 %v1550_v47, %s2158_s1 }
 0x372   :  { %1559 = vrot.lane.b32.xlu0 %v1551_v48, %s2158_s1 }
 0x375   :  { %1577 = vrot.lane.b32.xlu1 %v1570_v49, %s2159_s2 }
 0x376   :  { %1579 = vrot.lane.b32.xlu0 %v1571_v50, %s2159_s2 }
 0x3c0   :  { %v1456_v51 = vpop.permute.xlu0 %1455 }
 0x3c1   :  { %v1476_v52 = vpop.permute.xlu1 %1475  ;;  %1465 = vst.msk [vmem:[#allocation8 + $0x8] sm:$0xff] %vm1464_vm8, %v1456_v51 }
 0x3c2   :  { %1485 = vst.msk [vmem:[#allocation8 + $0x8] sm:$0xff] %vm1484_vm9, %v1476_v52 }
 0x3c4   :  { %v1496_v43 = vpop.permute.xlu0 %1495 }
 0x3c5   :  { %1505 = vst.msk [vmem:[#allocation8 + $0x8] sm:$0xff] %vm1504_vm10, %v1496_v43 }
 0x3c7   :  { %v1458_v28 = vpop.permute.xlu1 %1457 }
 0x3c8   :  { %1466 = vst.msk [vmem:[#allocation8 + $0x10] sm:$0xff] %vm1464_vm8, %v1458_v28  ;;  %v1516_v54 = vpop.permute.xlu0 %1515  ;;  %vm1765_vm8 = vcmp.ne.s32.totalorder %v1739_v15, 0 }
 0x3c9   :  { %1525 = vst.msk [vmem:[#allocation8 + $0x8] sm:$0xff] %vm1524_vm12, %v1516_v54 }
 0x3cb   :  { %v1460_v55 = vpop.permute.xlu1 %1459 }
 0x3cc   :  { %1468 = vst.msk [vmem:[#allocation8 + $0x18] sm:$0x1] %vm1467_vm13, %v1460_v55  ;;  %v1478_v56 = vpop.permute.xlu0 %1477  ;;  %vm1767_vm13 = vcmp.ne.s32.totalorder %v1761_v39, 0 }
 0x3cd   :  { %1486 = vst.msk [vmem:[#allocation8 + $0x10] sm:$0xff] %vm1484_vm9, %v1478_v56  ;;  %vm1769_vm9 = vcmp.lt.s32.totalorder %v1739_v15, 0 }
 0x3cf   :  { %v1536_v57 = vpop.permute.xlu1 %1535 }
 0x3d0   :  { %1545 = vst.msk [vmem:[#allocation8 + $0x8] sm:$0xff] %vm1544_vm14, %v1536_v57  ;;  %v1480_v32 = vpop.permute.xlu0 %1479 }
 0x3d1   :  { %1488 = vst.msk [vmem:[#allocation8 + $0x18] sm:$0x1] %vm1487_vm15, %v1480_v32  ;;  %vm1766_vm15 = vcmp.ne.s32.totalorder %v1750_v26, 0 }
 0x3d3   :  { %v1498_v58 = vpop.permute.xlu1 %1497 }
 0x3d4   :  { %1506 = vst.msk [vmem:[#allocation8 + $0x10] sm:$0xff] %vm1504_vm10, %v1498_v58  ;;  %v1556_v59 = vpop.permute.xlu0 %1555  ;;  %vm1773_vm10 = vmand %vm1769_vm9, %vm1765_vm8 }
 0x3d5   :  { %1565 = vst.msk [vmem:[#allocation8 + $0x8] sm:$0xff] %vm1564_vm2, %v1556_v59  ;;  %v1781_v16 = vsel %vm1773_vm10, %v1777_v8, %v1739_v15 }
 0x3d7   :  { %v1500_v60 = vpop.permute.xlu1 %1499 }
 0x3d8   :  { %1508 = vst.msk [vmem:[#allocation8 + $0x18] sm:$0x1] %vm1507_vm5, %v1500_v60  ;;  %v1518_v62 = vpop.permute.xlu0 %1517 }
 0x3d9   :  { %1526 = vst.msk [vmem:[#allocation8 + $0x10] sm:$0xff] %vm1524_vm12, %v1518_v62  ;;  %vm1785_vm12 = vcmp.lt.s32.totalorder %v1781_v16, 7 }
 0x3db   :  { %v1576_v63 = vpop.permute.xlu1 %1575 }
 0x3dc   :  { %1585 = vst.msk [vmem:[#allocation8 + $0x8] sm:$0xff] %vm1584_vm4, %v1576_v63  ;;  %v1520_v0 = vpop.permute.xlu0 %1519 }
 0x3dd   :  { %1528 = vst.msk [vmem:[#allocation8 + $0x18] sm:$0x1] %vm1527_vm11, %v1520_v0 }
 0x3df   :  { %v1538_v1 = vpop.permute.xlu1 %1537 }
 0x3e0   :  { %1546 = vst.msk [vmem:[#allocation8 + $0x10] sm:$0xff] %vm1544_vm14, %v1538_v1  ;;  %v1540_v3 = vpop.permute.xlu0 %1539  ;;  %vm1771_vm14 = vcmp.lt.s32.totalorder %v1761_v39, 0 }
 0x3e1   :  { %1548 = vst.msk [vmem:[#allocation8 + $0x18] sm:$0x1] %vm1547_vm0, %v1540_v3  ;;  %vm1775_vm5 = vmand %vm1771_vm14, %vm1767_vm13 }
 0x3e2   :  { %v1783_v34 = vsel %vm1775_vm5, %v1779_v27, %v1761_v39 }
 0x3e3   :  { %v1558_v4 = vpop.permute.xlu1 %1557  ;;  %v1590_v5 = vld [vmem:[#allocation8 + $0x8] sm:$0xff]  ;;  %vm1787_vm11 = vcmp.lt.s32.totalorder %v1783_v34, 7 }
 0x3e4   :  { %1566 = vst.msk [vmem:[#allocation8 + $0x10] sm:$0xff] %vm1564_vm2, %v1558_v4  ;;  %2018 = vmatmul.mubr.f32.vlgmr.msra.gmra.mrb[6].mxu1 %v1590_v5  ;;  %v1560_v6 = vpop.permute.xlu0 %1559  ;;  %vm1770_vm2 = vcmp.lt.s32.totalorder %v1750_v26, 0 }
 0x3e5   :  { %1568 = vst.msk [vmem:[#allocation8 + $0x18] sm:$0x1] %vm1567_vm1, %v1560_v6  ;;  %vm1819_vm1 = vcmask 123904  }
 0x3e7   :  { %v1578_v9 = vpop.permute.xlu1 %1577 }
 0x3e8   :  { %1586 = vst.msk [vmem:[#allocation8 + $0x10] sm:$0xff] %vm1584_vm4, %v1578_v9  ;;  %v1580_v10 = vpop.permute.xlu0 %1579  ;;  %vm1774_vm4 = vmand %vm1770_vm2, %vm1766_vm15 }
 0x3e9   :  { %1588 = vst.msk [vmem:[#allocation8 + $0x18] sm:$0x1] %vm1587_vm7, %v1580_v10  ;;  %v1782_v30 = vsel %vm1774_vm4, %v1778_v29, %v1750_v26 }
 0x3ea   :  { %vm1786_vm0 = vcmp.lt.s32.totalorder %v1782_v30, 7 }
 0x3ef   :  { %v1591_v2 = vld [vmem:[#allocation8 + $0x10] sm:$0xff] }
 0x3f0   :  { %2020 = vmatprep.mubr.f32.mxu1 %v1591_v2  ;;  %v1592_v11 = vld [vmem:[#allocation8 + $0x18] sm:$0xf] }
 0x3f1   :  { %2021 = vmatmul.mubr.f32.gmra.mrb[8].mxu1 %v1592_v11 }
 0x4b7   :  { %v2019_v20 = vpop.f32.mrb[6].mxu1 }
 0x4b8   :  { %v1702_v12 = vmul.f32 %v2019_v20, %v1868_v19  ;;  %v1675_v23 = vpop.f32.mrb[7].mxu1 }
 0x4ba   :  { %v1713_v24 = vadd.f32 %v1869_v18, %v1702_v12 }
 0x4bc   :  { %v1717_v25 = vmax.f32 %v1713_v24, 0.0 }
 0x4be   :  { %v1801_v46 = vsel %vm1785_vm12, %v1717_v25, 0.0 }
 0x4bf   :  { %1805 = vst.msk [vmem:[#allocation9 + $0x8] sm:$0xff] %vm1413_vm3, %v1801_v46 }
 0x4c4   :  { %v2022_v31 = vpop.f32.mrb[8].mxu1 }
 0x4c5   :  { %v1704_v33 = vmul.f32 %v2022_v31, %v1868_v19  ;;  %v1685_v7 = vpop.f32.mrb[9].mxu1 }
 0x4c6   :  { %v1703_v35 = vmul.f32 %v1868_v19, %v1685_v7 }
 0x4c7   :  { %v1715_v36 = vadd.f32 %v1869_v18, %v1704_v33 }
 0x4c8   :  { %v1714_v22 = vadd.f32 %v1869_v18, %v1703_v35 }
 0x4c9   :  { %v1719_v37 = vmax.f32 %v1715_v36, 0.0 }
 0x4ca   :  { %v1718_v38 = vmax.f32 %v1714_v22, 0.0 }
 0x4cb   :  { %v1803_v40 = vsel %vm1787_vm11, %v1719_v37, 0.0 }
 0x4cc   :  { %1807 = vst.msk [vmem:[#allocation9 + $0x18] sm:$0xf] %vm1438_vm6, %v1803_v40  ;;  %v1802_v41 = vsel %vm1786_vm0, %v1718_v38, 0.0 }
 0x4cd   :  { %1806 = vst.msk [vmem:[#allocation9 + $0x10] sm:$0xff] %vm1413_vm3, %v1802_v41 }
 0x4d3   :  { %v1815_v42 = vld [vmem:[#allocation9 + $0x18] ss:$2 sm:$0x3] }
 0x4d4   :  { %v1809_v44 = vld [vmem:[#allocation9 + $0x7] ss:$2 sm:$0xff]  ;;  %v1811_v45 = vld [vmem:[#allocation9 + $0x17] ss:$2 sm:$0x3] }
 0x4d5   :  { %v1813_v47 = vld [vmem:[#allocation9 + $0x8] ss:$2 sm:$0xff]  ;;  %v1817_v48 = vmax.f32 %v1811_v45, %v1815_v42 }
 0x4d6   :  { %v1816_v49 = vmax.f32 %v1809_v44, %v1813_v47 }
 0x4d7   :  { %1820 = vst.msk [vmem:[#allocation10 + $0x8] sm:$0x3] %vm1819_vm1, %v1817_v48 }
 0x4d8   :  { %1818 = vst.msk [vmem:[#allocation10] sm:$0xff] %vm1413_vm3, %v1816_v49 }
 0x4d9   :  { %2129 = shalt.err (!%p2126_p4)
}
 0x4da   :  { %s2130_s26 = scalar_lea.hbm %s2989_s10, 256 }
 0x4db   :  { %p2131_p5 = scmp.ne.s32.totalorder %s2989_s10, %s2130_s26  ;;  %p2134_p6 = scmp.lt.u32.totalorder %s2130_s26, %s2989_s10 }
 0x4dd   :  { %p2136_p7 = pnand %p2134_p6, %p2131_p5 }
 0x4df   :  { %2139 = shalt.err (!%p2136_p7)
}
 0x4e0   :  { %s2161_s27 = smov 128  }
 0x4e1   :  { %1832 = dma.vmem_to_hbm [thread:$0]  %s1827_s9, 256, %s2989_s10, [#allocation11], %s2161_s27, %s2161_s27, %s2145_s24  }
 0x4e2   :  { %2140 = dma.done.wait [#allocation11], 256  }
 0x4e3   :  { %2141 = vsyncadd [#allocation11], 4294967040 }
 0x4e4   :  { %1836 = vsyncpa [#allocation11], 1 }

</bundles_post_ra>
